<compile_context>
chip_gen: v7x
topology: tpu7x:2x2x1
jax: 0.10.0
libtpu: 0.0.40
codegen_flags: <defaults>
</compile_context>

<pallas_src>
import numpy as np
import jax
import jax.numpy as jnp
from jax.experimental import pallas as pl
from jax.experimental.pallas import tpu as pltpu


def _leaky_relu(x):
    return jnp.where(x > 0, x, 0.01 * x)


def _elu(x):
    # ELU(alpha=1): x > 0 ? x : exp(x) - 1
    return jnp.where(x > 0, x, jnp.exp(jnp.minimum(x, 0.0)) - 1.0)


def global_pool_kernel(
    counts_ref,                                   # scalar-prefetch: (B,) int32 nodes-per-graph
    node_ref,                                     # (1, tile_n, F) bf16   padded node feats
    gfeat_ref,                                    # (1, 1, F)     f32     this graph's g_feats
    w_ln_ref, w_lg_ref, b_l_ref,                  # logits Linear: (1,F),(1,F),(1,1) f32
    w_p_ref, b_p_ref,                             # project_nodes: (F,F) bf16, (1,F) f32
    w_ih_ref, w_hh_ref, b_ih_ref, b_hh_ref,       # GRU: (3,F,F) bf16, (3,F,F) bf16, (3,1,F), (3,1,F)
    out_ref,                                      # (1, 1, F) f32
    m_sc, l_sc, acc_sc,                           # VMEM scratch: (1,1),(1,1),(1,F) f32
):
    f32 = jnp.float32
    b = pl.program_id(0)
    t = pl.program_id(1)
    n_tiles = pl.num_programs(1)
    tile_n = node_ref.shape[1]

    @pl.when(t == 0)
    def _():
        m_sc[...] = jnp.full_like(m_sc, -1e30)
        l_sc[...] = jnp.zeros_like(l_sc)
        acc_sc[...] = jnp.zeros_like(acc_sc)

    nodes_bf = node_ref[0]                        # (tile_n, F) bf16
    nodes_f32 = nodes_bf.astype(f32)
    gfeat = gfeat_ref[0]                          # (1, F) f32

    # valid-node mask for this tile, built from the scalar-prefetched node count
    count = counts_ref[b]
    row = jax.lax.broadcasted_iota(jnp.int32, (tile_n, 1), 0) + t * tile_n
    mask = row < count                            # (tile_n, 1) bool

    # compute_logits: LeakyReLU(Linear(cat([relu(g_feats) broadcast, node_feats])))
    # width-1 projection on the VPU: elementwise multiply + lane reduce (no N=1 MXU matmul).
    g_term = jnp.sum(jnp.maximum(gfeat, 0.0) * w_lg_ref[...], axis=-1, keepdims=True)  # (1,1)
    n_term = jnp.sum(nodes_f32 * w_ln_ref[...], axis=-1, keepdims=True)                # (tile_n,1)
    z = _leaky_relu(n_term + g_term + b_l_ref[...])                                    # (tile_n,1)
    z = jnp.where(mask, z, jnp.float32(-1e30))

    # project_nodes (Dropout = identity in eval) — bf16 MXU matmul, f32 accumulate.
    # TODO(synk): train-mode Dropout RNG masking is not implemented (eval-mode identity).
    hv = jnp.dot(nodes_bf, w_p_ref[...], preferred_element_type=f32) + b_p_ref[...]    # (tile_n,F)

    # online softmax-over-nodes accumulation (per-graph segment softmax + weighted sum)
    m_prev = m_sc[...]                                                                  # (1,1)
    m_new = jnp.maximum(m_prev, jnp.max(z, axis=0, keepdims=True))
    alpha = jnp.exp(m_prev - m_new)
    p = jnp.where(mask, jnp.exp(z - m_new), 0.0)                                        # (tile_n,1)
    l_sc[...] = alpha * l_sc[...] + jnp.sum(p, axis=0, keepdims=True)
    acc_sc[...] = alpha * acc_sc[...] + jnp.sum(p * hv, axis=0, keepdims=True)
    m_sc[...] = m_new

    @pl.when(t == n_tiles - 1)
    def _():
        g_repr = acc_sc[...] / l_sc[...]          # (1, F)  = sum_nodes(hv, weight=softmax(z))
        context = _elu(g_repr)

        h_prev = gfeat                            # GRU hidden state = g_feats (f32)
        ctx_bf = context.astype(jnp.bfloat16)
        h_bf = h_prev.astype(jnp.bfloat16)

        # PyTorch GRUCell, gate order r, z, n; each gate is its own lane-dense (F,F) matmul.
        gi_r = jnp.dot(ctx_bf, w_ih_ref[0], preferred_element_type=f32) + b_ih_ref[0]
        gi_z = jnp.dot(ctx_bf, w_ih_ref[1], preferred_element_type=f32) + b_ih_ref[1]
        gi_n = jnp.dot(ctx_bf, w_ih_ref[2], preferred_element_type=f32) + b_ih_ref[2]
        gh_r = jnp.dot(h_bf, w_hh_ref[0], preferred_element_type=f32) + b_hh_ref[0]
        gh_z = jnp.dot(h_bf, w_hh_ref[1], preferred_element_type=f32) + b_hh_ref[1]
        gh_n = jnp.dot(h_bf, w_hh_ref[2], preferred_element_type=f32) + b_hh_ref[2]

        r = jax.nn.sigmoid(gi_r + gh_r)
        zg = jax.nn.sigmoid(gi_z + gh_z)
        n = jnp.tanh(gi_n + r * gh_n)
        h_new = (1.0 - zg) * n + zg * h_prev      # (1, F)
        out_ref[...] = h_new[None]


def make_params(key, F_):
    """Deterministic PyTorch-style uniform(-1/sqrt(fan_in), 1/sqrt(fan_in)) init."""
    ks = jax.random.split(key, 8)

    def lin(k, fan_in, shape):
        bound = 1.0 / np.sqrt(fan_in)
        return jax.random.uniform(k, shape, jnp.float32, -bound, bound)

    return {
        "w_logit": lin(ks[0], 2 * F_, (2 * F_, 1)),   # compute_logits Linear (cols: [g | node])
        "b_logit": lin(ks[1], 2 * F_, (1, 1)),
        "w_proj":  lin(ks[2], F_, (F_, F_)),          # project_nodes Linear
        "b_proj":  lin(ks[3], F_, (1, F_)),
        "w_ih":    lin(ks[4], F_, (F_, 3 * F_)),      # GRUCell weight_ih.T (gates r,z,n)
        "w_hh":    lin(ks[5], F_, (F_, 3 * F_)),      # GRUCell weight_hh.T
        "b_ih":    lin(ks[6], F_, (1, 3 * F_)),
        "b_hh":    lin(ks[7], F_, (1, 3 * F_)),
    }


def global_pool(node_feats, g_feats, node_counts, params, tile_n=8):
    V, F_ = node_feats.shape
    B = g_feats.shape[0]

    counts_np = np.asarray(node_counts, np.int64)
    assert counts_np.sum() == V and counts_np.min() >= 1
    offsets = np.concatenate([[0], np.cumsum(counts_np)[:-1]]).astype(np.int32)
    max_n = int(counts_np.max())
    max_n_pad = int(tile_n * ((max_n + tile_n - 1) // tile_n))
    n_tiles = max_n_pad // tile_n

    # Wrapper-side layout plumbing: contiguous per-graph node segments -> padded (B, max_N, F).
    pos = np.arange(max_n_pad, dtype=np.int32)
    valid = pos[None, :] < counts_np[:, None]                      # (B, max_N)
    gather_idx = np.where(valid, offsets[:, None] + pos[None, :], 0).astype(np.int32)
    node_pad = jnp.where(jnp.asarray(valid)[..., None],
                         node_feats[jnp.asarray(gather_idx)], 0.0).astype(jnp.bfloat16)

    counts = jnp.asarray(counts_np, jnp.int32)
    g3 = g_feats.reshape(B, 1, F_).astype(jnp.float32)

    # Split / reshape parameters into lane-dense, kernel-friendly layouts.
    w_logit = params["w_logit"]                                    # (2F, 1)
    w_lg = w_logit[:F_, 0][None, :]                                # (1, F)  graph-feat half
    w_ln = w_logit[F_:, 0][None, :]                                # (1, F)  node-feat half
    b_l = params["b_logit"].reshape(1, 1)
    w_p = params["w_proj"].astype(jnp.bfloat16)
    b_p = params["b_proj"].reshape(1, F_)

    def split3(w):  # (F, 3F) -> (3, F, F)
        return jnp.stack([w[:, :F_], w[:, F_:2 * F_], w[:, 2 * F_:]], axis=0)

    def split3b(bias):  # (1, 3F) -> (3, 1, F)
        return jnp.stack([bias[:, :F_], bias[:, F_:2 * F_], bias[:, 2 * F_:]], axis=0)

    w_ih3 = split3(params["w_ih"]).astype(jnp.bfloat16)
    w_hh3 = split3(params["w_hh"]).astype(jnp.bfloat16)
    b_ih3 = split3b(params["b_ih"])
    b_hh3 = split3b(params["b_hh"])

    const2 = lambda b, t, c: (0, 0)
    const3 = lambda b, t, c: (0, 0, 0)

    grid_spec = pltpu.PrefetchScalarGridSpec(
        num_scalar_prefetch=1,
        grid=(B, n_tiles),
        in_specs=[
            pl.BlockSpec((1, tile_n, F_), lambda b, t, c: (b, t, 0)),   # node_pad
            pl.BlockSpec((1, 1, F_), lambda b, t, c: (b, 0, 0)),        # g_feats
            pl.BlockSpec((1, F_), const2),                              # w_ln
            pl.BlockSpec((1, F_), const2),                              # w_lg
            pl.BlockSpec((1, 1), const2),                               # b_l
            pl.BlockSpec((F_, F_), const2),                             # w_proj
            pl.BlockSpec((1, F_), const2),                              # b_proj
            pl.BlockSpec((3, F_, F_), const3),                          # w_ih (3 gates)
            pl.BlockSpec((3, F_, F_), const3),                          # w_hh (3 gates)
            pl.BlockSpec((3, 1, F_), const3),                           # b_ih
            pl.BlockSpec((3, 1, F_), const3),                           # b_hh
        ],
        out_specs=pl.BlockSpec((1, 1, F_), lambda b, t, c: (b, 0, 0)),
        scratch_shapes=[
            pltpu.VMEM((1, 1), jnp.float32),    # running max
            pltpu.VMEM((1, 1), jnp.float32),    # running denom
            pltpu.VMEM((1, F_), jnp.float32),   # running weighted-sum accumulator
        ],
    )

    out = pl.pallas_call(
        global_pool_kernel,
        out_shape=jax.ShapeDtypeStruct((B, 1, F_), jnp.float32),
        grid_spec=grid_spec,
        compiler_params=pltpu.CompilerParams(
            dimension_semantics=("parallel", "arbitrary"),
            vmem_limit_bytes=32 * 1024 * 1024,
        ),
    )(counts, node_pad, g3, w_ln, w_lg, b_l, w_p, b_p, w_ih3, w_hh3, b_ih3, b_hh3)
    return out.reshape(B, F_)


def reference(node_feats, g_feats, graph_ids, B, params):
    """Pure-JAX f32 reference mirroring the DGL/PyTorch GlobalPool forward."""
    F_ = node_feats.shape[1]
    relu_g = jnp.maximum(g_feats, 0.0)
    cat = jnp.concatenate([relu_g[graph_ids], node_feats], axis=1)          # (V, 2F)
    z = _leaky_relu(cat @ params["w_logit"] + params["b_logit"])            # (V, 1)
    zf = z[:, 0]
    seg_max = jax.ops.segment_max(zf, graph_ids, num_segments=B)
    ex = jnp.exp(zf - seg_max[graph_ids])
    denom = jax.ops.segment_sum(ex, graph_ids, num_segments=B)
    a = (ex / denom[graph_ids])[:, None]                                    # (V, 1)
    hv = node_feats @ params["w_proj"] + params["b_proj"]                   # (V, F)
    g_repr = jax.ops.segment_sum(a * hv, graph_ids, num_segments=B)         # (B, F)
    context = _elu(g_repr)
    gi = context @ params["w_ih"] + params["b_ih"]
    gh = g_feats @ params["w_hh"] + params["b_hh"]
    r = jax.nn.sigmoid(gi[:, :F_] + gh[:, :F_])
    zg = jax.nn.sigmoid(gi[:, F_:2 * F_] + gh[:, F_:2 * F_])
    n = jnp.tanh(gi[:, 2 * F_:] + r * gh[:, 2 * F_:])
    return (1.0 - zg) * n + zg * g_feats


if __name__ == "__main__":
    # Batched graph: 4 graphs with different node counts; feat_size = 128 (lane-dense).
    B = 4
    node_counts = [10, 16, 7, 13]
    V = int(sum(node_counts))
    F_ = 128

    key = jax.random.PRNGKey(0)
    k1, k2, kp = jax.random.split(key, 3)
    node_feats = jax.random.normal(k1, (V, F_), jnp.float32)
    g_feats = jax.random.normal(k2, (B, F_), jnp.float32)
    params = make_params(kp, F_)

    out = jax.block_until_ready(global_pool(node_feats, g_feats, node_counts, params, tile_n=8))

    graph_ids = jnp.asarray(np.repeat(np.arange(B), node_counts), jnp.int32)
    ref = reference(node_feats, g_feats, graph_ids, B, params)

    assert out.shape == (B, F_)
    # bf16 MXU inputs (f32 accumulation) -> slightly looser tolerance than pure f32.
    np.testing.assert_allclose(np.asarray(out), np.asarray(ref), rtol=5e-2, atol=5e-2)
    print("KERNEL_OK")
</pallas_src>

<mosaic_0001>
module attributes {stable_mosaic.version = 11 : i64} {
  func.func @global_pool_kernel(%arg0: i32, %arg1: i32, %arg2: memref<4xi32, #tpu.memory_space<smem>>, %arg3: memref<1x8x128xbf16, #tpu.memory_space<vmem>>, %arg4: memref<1x1x128xf32, #tpu.memory_space<vmem>>, %arg5: memref<1x128xf32, #tpu.memory_space<vmem>>, %arg6: memref<1x128xf32, #tpu.memory_space<vmem>>, %arg7: memref<1x1xf32, #tpu.memory_space<vmem>>, %arg8: memref<128x128xbf16, #tpu.memory_space<vmem>>, %arg9: memref<1x128xf32, #tpu.memory_space<vmem>>, %arg10: memref<3x128x128xbf16, #tpu.memory_space<vmem>>, %arg11: memref<3x128x128xbf16, #tpu.memory_space<vmem>>, %arg12: memref<3x1x128xf32, #tpu.memory_space<vmem>>, %arg13: memref<3x1x128xf32, #tpu.memory_space<vmem>>, %arg14: memref<1x1x128xf32, #tpu.memory_space<vmem>>, %arg15: memref<1x1xf32, #tpu.memory_space<vmem>>, %arg16: memref<1x1xf32, #tpu.memory_space<vmem>>, %arg17: memref<1x128xf32, #tpu.memory_space<vmem>>) attributes {dimension_semantics = [#tpu.dimension_semantics<parallel>, #tpu.dimension_semantics<arbitrary>], iteration_bounds = array<i64: 4, 2>, scalar_prefetch = 1 : i64, scratch_operands = 3 : i64, tpu.core_type = #tpu.core_type<tc>, window_params = [{transform_indices = @transform_0, window_bounds = array<i64: 1, 8, 128>}, {transform_indices = @transform_1, window_bounds = array<i64: 1, 1, 128>}, {pipeline_mode = #tpu.pipeline_mode<synchronous>, transform_indices = @transform_2, window_bounds = array<i64: 1, 128>}, {pipeline_mode = #tpu.pipeline_mode<synchronous>, transform_indices = @transform_3, window_bounds = array<i64: 1, 128>}, {pipeline_mode = #tpu.pipeline_mode<synchronous>, transform_indices = @transform_4, window_bounds = array<i64: 1, 1>}, {pipeline_mode = #tpu.pipeline_mode<synchronous>, transform_indices = @transform_5, window_bounds = array<i64: 128, 128>}, {pipeline_mode = #tpu.pipeline_mode<synchronous>, transform_indices = @transform_6, window_bounds = array<i64: 1, 128>}, {pipeline_mode = #tpu.pipeline_mode<synchronous>, transform_indices = @transform_7, window_bounds = array<i64: 3, 128, 128>}, {pipeline_mode = #tpu.pipeline_mode<synchronous>, transform_indices = @transform_8, window_bounds = array<i64: 3, 128, 128>}, {pipeline_mode = #tpu.pipeline_mode<synchronous>, transform_indices = @transform_9, window_bounds = array<i64: 3, 1, 128>}, {pipeline_mode = #tpu.pipeline_mode<synchronous>, transform_indices = @transform_10, window_bounds = array<i64: 3, 1, 128>}, {transform_indices = @transform_11, window_bounds = array<i64: 1, 1, 128>}]} {
    %c0_i32 = arith.constant 0 : i32
    %0 = arith.cmpi eq, %arg1, %c0_i32 : i32
    %1 = arith.extui %0 : i1 to i32
    %c0_i32_0 = arith.constant 0 : i32
    %2 = arith.cmpi ne, %1, %c0_i32_0 : i32
    scf.if %2 {
      %cst_39 = arith.constant -1.000000e+30 : f32
      %74 = vector.broadcast %cst_39 : f32 to vector<1x1xf32>
      %c0_40 = arith.constant 0 : index
      %c0_41 = arith.constant 0 : index
      %75 = vector.load %arg15[%c0_40, %c0_41] : memref<1x1xf32, #tpu.memory_space<vmem>>, vector<1x1xf32>
      tpu.vector_store %arg15[%c0_40, %c0_41], %74 {strides = array<i32>} : memref<1x1xf32, #tpu.memory_space<vmem>>, vector<1x1xf32>,
      %cst_42 = arith.constant 0.000000e+00 : f32
      %76 = vector.broadcast %cst_42 : f32 to vector<1x1xf32>
      %c0_43 = arith.constant 0 : index
      %c0_44 = arith.constant 0 : index
      %77 = vector.load %arg16[%c0_43, %c0_44] : memref<1x1xf32, #tpu.memory_space<vmem>>, vector<1x1xf32>
      tpu.vector_store %arg16[%c0_43, %c0_44], %76 {strides = array<i32>} : memref<1x1xf32, #tpu.memory_space<vmem>>, vector<1x1xf32>,
      %cst_45 = arith.constant 0.000000e+00 : f32
      %78 = vector.broadcast %cst_45 : f32 to vector<1x128xf32>
      %c0_46 = arith.constant 0 : index
      %c0_47 = arith.constant 0 : index
      %79 = vector.load %arg17[%c0_46, %c0_47] : memref<1x128xf32, #tpu.memory_space<vmem>>, vector<1x128xf32>
      tpu.vector_store %arg17[%c0_46, %c0_47], %78 {strides = array<i32>} : memref<1x128xf32, #tpu.memory_space<vmem>>, vector<1x128xf32>,
    } else {
    }
    %c0 = arith.constant 0 : index
    %c0_1 = arith.constant 0 : index
    %c0_2 = arith.constant 0 : index
    %3 = vector.load %arg3[%c0, %c0_1, %c0_2] : memref<1x8x128xbf16, #tpu.memory_space<vmem>>, vector<1x8x128xbf16>
    %4 = vector.shape_cast %3 : vector<1x8x128xbf16> to vector<8x128xbf16>
    %5 = arith.extf %4 : vector<8x128xbf16> to vector<8x128xf32>
    %c0_3 = arith.constant 0 : index
    %c0_4 = arith.constant 0 : index
    %c0_5 = arith.constant 0 : index
    %6 = vector.load %arg4[%c0_3, %c0_4, %c0_5] : memref<1x1x128xf32, #tpu.memory_space<vmem>>, vector<1x1x128xf32>
    %7 = vector.shape_cast %6 : vector<1x1x128xf32> to vector<1x128xf32>
    %8 = arith.index_cast %arg0 : i32 to index
    %9 = memref.load %arg2[%8] : memref<4xi32, #tpu.memory_space<smem>>
    %10 = tpu.iota {dimensions = array<i32: 0>} : vector<8x1xi32>
    %c8_i32 = arith.constant 8 : i32
    %11 = arith.muli %arg1, %c8_i32 : i32
    %12 = vector.broadcast %11 : i32 to vector<8x1xi32>
    %13 = arith.addi %10, %12 : vector<8x1xi32>
    %14 = vector.broadcast %9 : i32 to vector<8x1xi32>
    %15 = arith.cmpi slt, %13, %14 : vector<8x1xi32>
    %cst = arith.constant 0.000000e+00 : f32
    %16 = vector.broadcast %cst : f32 to vector<1x128xf32>
    %17 = arith.maximumf %7, %16 : vector<1x128xf32>
    %c0_6 = arith.constant 0 : index
    %c0_7 = arith.constant 0 : index
    %18 = vector.load %arg6[%c0_6, %c0_7] : memref<1x128xf32, #tpu.memory_space<vmem>>, vector<1x128xf32>
    %19 = arith.mulf %17, %18 : vector<1x128xf32>
    %cst_8 = arith.constant dense<0.000000e+00> : vector<1xf32>
    %20 = vector.multi_reduction <add>, %19, %cst_8 [1] : vector<1x128xf32> to vector<1xf32>
    %21 = vector.shape_cast %20 : vector<1xf32> to vector<1x1xf32>
    %c0_9 = arith.constant 0 : index
    %c0_10 = arith.constant 0 : index
    %22 = vector.load %arg5[%c0_9, %c0_10] : memref<1x128xf32, #tpu.memory_space<vmem>>, vector<1x128xf32>
    %23 = vector.broadcast %22 : vector<1x128xf32> to vector<8x128xf32>
    %24 = arith.mulf %5, %23 : vector<8x128xf32>
    %cst_11 = arith.constant dense<0.000000e+00> : vector<8xf32>
    %25 = vector.multi_reduction <add>, %24, %cst_11 [1] : vector<8x128xf32> to vector<8xf32>
    %26 = vector.shape_cast %25 : vector<8xf32> to vector<8x1xf32>
    %27 = vector.broadcast %21 : vector<1x1xf32> to vector<8x1xf32>
    %28 = arith.addf %26, %27 : vector<8x1xf32>
    %c0_12 = arith.constant 0 : index
    %c0_13 = arith.constant 0 : index
    %29 = vector.load %arg7[%c0_12, %c0_13] : memref<1x1xf32, #tpu.memory_space<vmem>>, vector<1x1xf32>
    %30 = vector.broadcast %29 : vector<1x1xf32> to vector<8x1xf32>
    %31 = arith.addf %28, %30 : vector<8x1xf32>
    %cst_14 = arith.constant 0.000000e+00 : f32
    %32 = vector.broadcast %cst_14 : f32 to vector<8x1xf32>
    %33 = arith.cmpf ogt, %31, %32 : vector<8x1xf32>
    %cst_15 = arith.constant 0.00999999977 : f32
    %34 = vector.broadcast %cst_15 : f32 to vector<8x1xf32>
    %35 = arith.mulf %34, %31 : vector<8x1xf32>
    %36 = arith.select %33, %31, %35 : vector<8x1xi1>, vector<8x1xf32>
    %cst_16 = arith.constant -1.000000e+30 : f32
    %37 = vector.broadcast %cst_16 : f32 to vector<8x1xf32>
    %38 = arith.select %15, %36, %37 : vector<8x1xi1>, vector<8x1xf32>
    %c0_17 = arith.constant 0 : index
    %c0_18 = arith.constant 0 : index
    %39 = vector.load %arg8[%c0_17, %c0_18] : memref<128x128xbf16, #tpu.memory_space<vmem>>, vector<128x128xbf16>
    %cst_19 = arith.constant dense<0.000000e+00> : vector<8x128xf32>
    %40 = tpu.matmul %4, %39, %cst_19 {dimension_numbers = #tpu.dot_dimension_numbers<[1], [0], [0], [1], [0, 0, 1, 1], [], []>} : vector<8x128xbf16>, vector<128x128xbf16>, vector<8x128xf32> -> vector<8x128xf32>
    %c0_20 = arith.constant 0 : index
    %c0_21 = arith.constant 0 : index
    %41 = vector.load %arg9[%c0_20, %c0_21] : memref<1x128xf32, #tpu.memory_space<vmem>>, vector<1x128xf32>
    %42 = vector.broadcast %41 : vector<1x128xf32> to vector<8x128xf32>
    %43 = arith.addf %40, %42 : vector<8x128xf32>
    %c0_22 = arith.constant 0 : index
    %c0_23 = arith.constant 0 : index
    %44 = vector.load %arg15[%c0_22, %c0_23] : memref<1x1xf32, #tpu.memory_space<vmem>>, vector<1x1xf32>
    %cst_24 = arith.constant dense<0xFF800000> : vector<1xf32>
    %45 = vector.multi_reduction <maximumf>, %38, %cst_24 [0] : vector<8x1xf32> to vector<1xf32>
    %46 = vector.shape_cast %45 : vector<1xf32> to vector<1x1xf32>
    %47 = arith.maximumf %44, %46 : vector<1x1xf32>
    %48 = arith.subf %44, %47 : vector<1x1xf32>
    %49 = math.exp %48 : vector<1x1xf32>
    %50 = vector.broadcast %47 : vector<1x1xf32> to vector<8x1xf32>
    %51 = arith.subf %38, %50 : vector<8x1xf32>
    %52 = math.exp %51 : vector<8x1xf32>
    %cst_25 = arith.constant 0.000000e+00 : f32
    %53 = vector.broadcast %cst_25 : f32 to vector<8x1xf32>
    %54 = arith.select %15, %52, %53 : vector<8x1xi1>, vector<8x1xf32>
    %c0_26 = arith.constant 0 : index
    %c0_27 = arith.constant 0 : index
    %55 = vector.load %arg16[%c0_26, %c0_27] : memref<1x1xf32, #tpu.memory_space<vmem>>, vector<1x1xf32>
    %56 = arith.mulf %49, %55 : vector<1x1xf32>
    %cst_28 = arith.constant dense<0.000000e+00> : vector<1xf32>
    %57 = vector.multi_reduction <add>, %54, %cst_28 [0] : vector<8x1xf32> to vector<1xf32>
    %58 = vector.shape_cast %57 : vector<1xf32> to vector<1x1xf32>
    %59 = arith.addf %56, %58 : vector<1x1xf32>
    %c0_29 = arith.constant 0 : index
    %c0_30 = arith.constant 0 : index
    %60 = vector.load %arg16[%c0_29, %c0_30] : memref<1x1xf32, #tpu.memory_space<vmem>>, vector<1x1xf32>
    tpu.vector_store %arg16[%c0_29, %c0_30], %59 {strides = array<i32>} : memref<1x1xf32, #tpu.memory_space<vmem>>, vector<1x1xf32>,
    %c0_31 = arith.constant 0 : index
    %c0_32 = arith.constant 0 : index
    %61 = vector.load %arg17[%c0_31, %c0_32] : memref<1x128xf32, #tpu.memory_space<vmem>>, vector<1x128xf32>
    %62 = vector.broadcast %49 : vector<1x1xf32> to vector<1x128xf32>
    %63 = arith.mulf %62, %61 : vector<1x128xf32>
    %64 = vector.broadcast %54 : vector<8x1xf32> to vector<8x128xf32>
    %65 = arith.mulf %64, %43 : vector<8x128xf32>
    %cst_33 = arith.constant dense<0.000000e+00> : vector<128xf32>
    %66 = vector.multi_reduction <add>, %65, %cst_33 [0] : vector<8x128xf32> to vector<128xf32>
    %67 = vector.shape_cast %66 : vector<128xf32> to vector<1x128xf32>
    %68 = arith.addf %63, %67 : vector<1x128xf32>
    %c0_34 = arith.constant 0 : index
    %c0_35 = arith.constant 0 : index
    %69 = vector.load %arg17[%c0_34, %c0_35] : memref<1x128xf32, #tpu.memory_space<vmem>>, vector<1x128xf32>
    tpu.vector_store %arg17[%c0_34, %c0_35], %68 {strides = array<i32>} : memref<1x128xf32, #tpu.memory_space<vmem>>, vector<1x128xf32>,
    %c0_36 = arith.constant 0 : index
    %c0_37 = arith.constant 0 : index
    %70 = vector.load %arg15[%c0_36, %c0_37] : memref<1x1xf32, #tpu.memory_space<vmem>>, vector<1x1xf32>
    tpu.vector_store %arg15[%c0_36, %c0_37], %47 {strides = array<i32>} : memref<1x1xf32, #tpu.memory_space<vmem>>, vector<1x1xf32>,
    %c1_i32 = arith.constant 1 : i32
    %71 = arith.cmpi eq, %arg1, %c1_i32 : i32
    %72 = arith.extui %71 : i1 to i32
    %c0_i32_38 = arith.constant 0 : i32
    %73 = arith.cmpi ne, %72, %c0_i32_38 : i32
    scf.if %73 {
      %c0_39 = arith.constant 0 : index
      %c0_40 = arith.constant 0 : index
      %74 = vector.load %arg17[%c0_39, %c0_40] : memref<1x128xf32, #tpu.memory_space<vmem>>, vector<1x128xf32>
      %c0_41 = arith.constant 0 : index
      %c0_42 = arith.constant 0 : index
      %75 = vector.load %arg16[%c0_41, %c0_42] : memref<1x1xf32, #tpu.memory_space<vmem>>, vector<1x1xf32>
      %76 = vector.broadcast %75 : vector<1x1xf32> to vector<1x128xf32>
      %77 = arith.divf %74, %76 : vector<1x128xf32>
      %cst_43 = arith.constant 0.000000e+00 : f32
      %78 = vector.broadcast %cst_43 : f32 to vector<1x128xf32>
      %79 = arith.cmpf ogt, %77, %78 : vector<1x128xf32>
      %cst_44 = arith.constant 0.000000e+00 : f32
      %80 = vector.broadcast %cst_44 : f32 to vector<1x128xf32>
      %81 = arith.minimumf %77, %80 : vector<1x128xf32>
      %82 = math.exp %81 : vector<1x128xf32>
      %cst_45 = arith.constant 1.000000e+00 : f32
      %83 = vector.broadcast %cst_45 : f32 to vector<1x128xf32>
      %84 = arith.subf %82, %83 : vector<1x128xf32>
      %85 = arith.select %79, %77, %84 : vector<1x128xi1>, vector<1x128xf32>
      %86 = arith.truncf %85 : vector<1x128xf32> to vector<1x128xbf16>
      %87 = arith.truncf %7 : vector<1x128xf32> to vector<1x128xbf16>
      %c0_46 = arith.constant 0 : index
      %c0_47 = arith.constant 0 : index
      %c0_48 = arith.constant 0 : index
      %88 = vector.load %arg10[%c0_46, %c0_47, %c0_48] : memref<3x128x128xbf16, #tpu.memory_space<vmem>>, vector<1x128x128xbf16>
      %89 = vector.shape_cast %88 : vector<1x128x128xbf16> to vector<128x128xbf16>
      %cst_49 = arith.constant dense<0.000000e+00> : vector<1x128xf32>
      %90 = tpu.matmul %86, %89, %cst_49 {dimension_numbers = #tpu.dot_dimension_numbers<[1], [0], [0], [1], [0, 0, 1, 1], [], []>} : vector<1x128xbf16>, vector<128x128xbf16>, vector<1x128xf32> -> vector<1x128xf32>
      %c0_50 = arith.constant 0 : index
      %c0_51 = arith.constant 0 : index
      %c0_52 = arith.constant 0 : index
      %91 = vector.load %arg12[%c0_50, %c0_51, %c0_52] : memref<3x1x128xf32, #tpu.memory_space<vmem>>, vector<1x1x128xf32>
      %92 = vector.shape_cast %91 : vector<1x1x128xf32> to vector<1x128xf32>
      %93 = arith.addf %90, %92 : vector<1x128xf32>
      %c1 = arith.constant 1 : index
      %c0_53 = arith.constant 0 : index
      %c0_54 = arith.constant 0 : index
      %94 = vector.load %arg10[%c1, %c0_53, %c0_54] : memref<3x128x128xbf16, #tpu.memory_space<vmem>>, vector<1x128x128xbf16>
      %95 = vector.shape_cast %94 : vector<1x128x128xbf16> to vector<128x128xbf16>
      %cst_55 = arith.constant dense<0.000000e+00> : vector<1x128xf32>
      %96 = tpu.matmul %86, %95, %cst_55 {dimension_numbers = #tpu.dot_dimension_numbers<[1], [0], [0], [1], [0, 0, 1, 1], [], []>} : vector<1x128xbf16>, vector<128x128xbf16>, vector<1x128xf32> -> vector<1x128xf32>
      %c1_56 = arith.constant 1 : index
      %c0_57 = arith.constant 0 : index
      %c0_58 = arith.constant 0 : index
      %97 = vector.load %arg12[%c1_56, %c0_57, %c0_58] : memref<3x1x128xf32, #tpu.memory_space<vmem>>, vector<1x1x128xf32>
      %98 = vector.shape_cast %97 : vector<1x1x128xf32> to vector<1x128xf32>
      %99 = arith.addf %96, %98 : vector<1x128xf32>
      %c2 = arith.constant 2 : index
      %c0_59 = arith.constant 0 : index
      %c0_60 = arith.constant 0 : index
      %100 = vector.load %arg10[%c2, %c0_59, %c0_60] : memref<3x128x128xbf16, #tpu.memory_space<vmem>>, vector<1x128x128xbf16>
      %101 = vector.shape_cast %100 : vector<1x128x128xbf16> to vector<128x128xbf16>
      %cst_61 = arith.constant dense<0.000000e+00> : vector<1x128xf32>
      %102 = tpu.matmul %86, %101, %cst_61 {dimension_numbers = #tpu.dot_dimension_numbers<[1], [0], [0], [1], [0, 0, 1, 1], [], []>} : vector<1x128xbf16>, vector<128x128xbf16>, vector<1x128xf32> -> vector<1x128xf32>
      %c2_62 = arith.constant 2 : index
      %c0_63 = arith.constant 0 : index
      %c0_64 = arith.constant 0 : index
      %103 = vector.load %arg12[%c2_62, %c0_63, %c0_64] : memref<3x1x128xf32, #tpu.memory_space<vmem>>, vector<1x1x128xf32>
      %104 = vector.shape_cast %103 : vector<1x1x128xf32> to vector<1x128xf32>
      %105 = arith.addf %102, %104 : vector<1x128xf32>
      %c0_65 = arith.constant 0 : index
      %c0_66 = arith.constant 0 : index
      %c0_67 = arith.constant 0 : index
      %106 = vector.load %arg11[%c0_65, %c0_66, %c0_67] : memref<3x128x128xbf16, #tpu.memory_space<vmem>>, vector<1x128x128xbf16>
      %107 = vector.shape_cast %106 : vector<1x128x128xbf16> to vector<128x128xbf16>
      %cst_68 = arith.constant dense<0.000000e+00> : vector<1x128xf32>
      %108 = tpu.matmul %87, %107, %cst_68 {dimension_numbers = #tpu.dot_dimension_numbers<[1], [0], [0], [1], [0, 0, 1, 1], [], []>} : vector<1x128xbf16>, vector<128x128xbf16>, vector<1x128xf32> -> vector<1x128xf32>
      %c0_69 = arith.constant 0 : index
      %c0_70 = arith.constant 0 : index
      %c0_71 = arith.constant 0 : index
      %109 = vector.load %arg13[%c0_69, %c0_70, %c0_71] : memref<3x1x128xf32, #tpu.memory_space<vmem>>, vector<1x1x128xf32>
      %110 = vector.shape_cast %109 : vector<1x1x128xf32> to vector<1x128xf32>
      %111 = arith.addf %108, %110 : vector<1x128xf32>
      %c1_72 = arith.constant 1 : index
      %c0_73 = arith.constant 0 : index
      %c0_74 = arith.constant 0 : index
      %112 = vector.load %arg11[%c1_72, %c0_73, %c0_74] : memref<3x128x128xbf16, #tpu.memory_space<vmem>>, vector<1x128x128xbf16>
      %113 = vector.shape_cast %112 : vector<1x128x128xbf16> to vector<128x128xbf16>
      %cst_75 = arith.constant dense<0.000000e+00> : vector<1x128xf32>
      %114 = tpu.matmul %87, %113, %cst_75 {dimension_numbers = #tpu.dot_dimension_numbers<[1], [0], [0], [1], [0, 0, 1, 1], [], []>} : vector<1x128xbf16>, vector<128x128xbf16>, vector<1x128xf32> -> vector<1x128xf32>
      %c1_76 = arith.constant 1 : index
      %c0_77 = arith.constant 0 : index
      %c0_78 = arith.constant 0 : index
      %115 = vector.load %arg13[%c1_76, %c0_77, %c0_78] : memref<3x1x128xf32, #tpu.memory_space<vmem>>, vector<1x1x128xf32>
      %116 = vector.shape_cast %115 : vector<1x1x128xf32> to vector<1x128xf32>
      %117 = arith.addf %114, %116 : vector<1x128xf32>
      %c2_79 = arith.constant 2 : index
      %c0_80 = arith.constant 0 : index
      %c0_81 = arith.constant 0 : index
      %118 = vector.load %arg11[%c2_79, %c0_80, %c0_81] : memref<3x128x128xbf16, #tpu.memory_space<vmem>>, vector<1x128x128xbf16>
      %119 = vector.shape_cast %118 : vector<1x128x128xbf16> to vector<128x128xbf16>
      %cst_82 = arith.constant dense<0.000000e+00> : vector<1x128xf32>
      %120 = tpu.matmul %87, %119, %cst_82 {dimension_numbers = #tpu.dot_dimension_numbers<[1], [0], [0], [1], [0, 0, 1, 1], [], []>} : vector<1x128xbf16>, vector<128x128xbf16>, vector<1x128xf32> -> vector<1x128xf32>
      %c2_83 = arith.constant 2 : index
      %c0_84 = arith.constant 0 : index
      %c0_85 = arith.constant 0 : index
      %121 = vector.load %arg13[%c2_83, %c0_84, %c0_85] : memref<3x1x128xf32, #tpu.memory_space<vmem>>, vector<1x1x128xf32>
      %122 = vector.shape_cast %121 : vector<1x1x128xf32> to vector<1x128xf32>
      %123 = arith.addf %120, %122 : vector<1x128xf32>
      %124 = arith.addf %93, %111 : vector<1x128xf32>
      %125 = arith.negf %124 : vector<1x128xf32>
      %126 = math.exp %125 : vector<1x128xf32>
      %cst_86 = arith.constant 1.000000e+00 : f32
      %127 = vector.broadcast %cst_86 : f32 to vector<1x128xf32>
      %128 = arith.addf %127, %126 : vector<1x128xf32>
      %129 = arith.divf %127, %128 : vector<1x128xf32>
      %130 = arith.addf %99, %117 : vector<1x128xf32>
      %131 = arith.negf %130 : vector<1x128xf32>
      %132 = math.exp %131 : vector<1x128xf32>
      %cst_87 = arith.constant 1.000000e+00 : f32
      %133 = vector.broadcast %cst_87 : f32 to vector<1x128xf32>
      %134 = arith.addf %133, %132 : vector<1x128xf32>
      %135 = arith.divf %133, %134 : vector<1x128xf32>
      %136 = arith.mulf %129, %123 : vector<1x128xf32>
      %137 = arith.addf %105, %136 : vector<1x128xf32>
      %138 = math.tanh %137 : vector<1x128xf32>
      %cst_88 = arith.constant 1.000000e+00 : f32
      %139 = vector.broadcast %cst_88 : f32 to vector<1x128xf32>
      %140 = arith.subf %139, %135 : vector<1x128xf32>
      %141 = arith.mulf %140, %138 : vector<1x128xf32>
      %142 = arith.mulf %135, %7 : vector<1x128xf32>
      %143 = arith.addf %141, %142 : vector<1x128xf32>
      %144 = vector.shape_cast %143 : vector<1x128xf32> to vector<1x1x128xf32>
      %c0_89 = arith.constant 0 : index
      %c0_90 = arith.constant 0 : index
      %c0_91 = arith.constant 0 : index
      %145 = vector.load %arg14[%c0_89, %c0_90, %c0_91] : memref<1x1x128xf32, #tpu.memory_space<vmem>>, vector<1x1x128xf32>
      tpu.vector_store %arg14[%c0_89, %c0_90, %c0_91], %144 {strides = array<i32>} : memref<1x1x128xf32, #tpu.memory_space<vmem>>, vector<1x1x128xf32>,
    } else {
    }
    return
  }
  func.func @transform_0(%arg0: i32, %arg1: i32, %arg2: memref<4xi32, #tpu.memory_space<smem>>) -> (i32, i32, i32) {
    %c0_i32 = arith.constant 0 : i32
    %c0_i32_0 = arith.constant 0 : i32
    return %arg0, %arg1, %c0_i32 : i32, i32, i32
  }
  func.func @transform_1(%arg0: i32, %arg1: i32, %arg2: memref<4xi32, #tpu.memory_space<smem>>) -> (i32, i32, i32) {
    %c0_i32 = arith.constant 0 : i32
    %c0_i32_0 = arith.constant 0 : i32
    %c0_i32_1 = arith.constant 0 : i32
    return %arg0, %c0_i32, %c0_i32_0 : i32, i32, i32
  }
  func.func @transform_2(%arg0: i32, %arg1: i32, %arg2: memref<4xi32, #tpu.memory_space<smem>>) -> (i32, i32) {
    %c0_i32 = arith.constant 0 : i32
    %c0_i32_0 = arith.constant 0 : i32
    %c0_i32_1 = arith.constant 0 : i32
    return %c0_i32, %c0_i32_0 : i32, i32
  }
  func.func @transform_3(%arg0: i32, %arg1: i32, %arg2: memref<4xi32, #tpu.memory_space<smem>>) -> (i32, i32) {
    %c0_i32 = arith.constant 0 : i32
    %c0_i32_0 = arith.constant 0 : i32
    %c0_i32_1 = arith.constant 0 : i32
    return %c0_i32, %c0_i32_0 : i32, i32
  }
  func.func @transform_4(%arg0: i32, %arg1: i32, %arg2: memref<4xi32, #tpu.memory_space<smem>>) -> (i32, i32) {
    %c0_i32 = arith.constant 0 : i32
    %c0_i32_0 = arith.constant 0 : i32
    %c0_i32_1 = arith.constant 0 : i32
    return %c0_i32, %c0_i32_0 : i32, i32
  }
  func.func @transform_5(%arg0: i32, %arg1: i32, %arg2: memref<4xi32, #tpu.memory_space<smem>>) -> (i32, i32) {
    %c0_i32 = arith.constant 0 : i32
    %c0_i32_0 = arith.constant 0 : i32
    %c0_i32_1 = arith.constant 0 : i32
    return %c0_i32, %c0_i32_0 : i32, i32
  }
  func.func @transform_6(%arg0: i32, %arg1: i32, %arg2: memref<4xi32, #tpu.memory_space<smem>>) -> (i32, i32) {
    %c0_i32 = arith.constant 0 : i32
    %c0_i32_0 = arith.constant 0 : i32
    %c0_i32_1 = arith.constant 0 : i32
    return %c0_i32, %c0_i32_0 : i32, i32
  }
  func.func @transform_7(%arg0: i32, %arg1: i32, %arg2: memref<4xi32, #tpu.memory_space<smem>>) -> (i32, i32, i32) {
    %c0_i32 = arith.constant 0 : i32
    %c0_i32_0 = arith.constant 0 : i32
    %c0_i32_1 = arith.constant 0 : i32
    %c0_i32_2 = arith.constant 0 : i32
    return %c0_i32, %c0_i32_0, %c0_i32_1 : i32, i32, i32
  }
  func.func @transform_8(%arg0: i32, %arg1: i32, %arg2: memref<4xi32, #tpu.memory_space<smem>>) -> (i32, i32, i32) {
    %c0_i32 = arith.constant 0 : i32
    %c0_i32_0 = arith.constant 0 : i32
    %c0_i32_1 = arith.constant 0 : i32
    %c0_i32_2 = arith.constant 0 : i32
    return %c0_i32, %c0_i32_0, %c0_i32_1 : i32, i32, i32
  }
  func.func @transform_9(%arg0: i32, %arg1: i32, %arg2: memref<4xi32, #tpu.memory_space<smem>>) -> (i32, i32, i32) {
    %c0_i32 = arith.constant 0 : i32
    %c0_i32_0 = arith.constant 0 : i32
    %c0_i32_1 = arith.constant 0 : i32
    %c0_i32_2 = arith.constant 0 : i32
    return %c0_i32, %c0_i32_0, %c0_i32_1 : i32, i32, i32
  }
  func.func @transform_10(%arg0: i32, %arg1: i32, %arg2: memref<4xi32, #tpu.memory_space<smem>>) -> (i32, i32, i32) {
    %c0_i32 = arith.constant 0 : i32
    %c0_i32_0 = arith.constant 0 : i32
    %c0_i32_1 = arith.constant 0 : i32
    %c0_i32_2 = arith.constant 0 : i32
    return %c0_i32, %c0_i32_0, %c0_i32_1 : i32, i32, i32
  }
  func.func @transform_11(%arg0: i32, %arg1: i32, %arg2: memref<4xi32, #tpu.memory_space<smem>>) -> (i32, i32, i32) {
    %c0_i32 = arith.constant 0 : i32
    %c0_i32_0 = arith.constant 0 : i32
    %c0_i32_1 = arith.constant 0 : i32
    return %arg0, %c0_i32, %c0_i32_0 : i32, i32, i32
  }
}

</mosaic_0001>

<bundles_post_ra>
// kernel: tpu_custom_call.1
= control target key start
LH: loop header
LB: loop body
LE: loop exit
PB: predicated region body
PF: predicated region fallthrough
CT: control target
= control target key end

     0   :  { %s2842_s0 = inlined_call_operand.hbm [shape: s32[4], index: 0, kind: input, shape index: {}]   ;;  %s2843_s1 = inlined_call_operand.hbm [shape: bf16[4,16,128], index: 1, kind: input, shape index: {}]   ;;  %s2844_s2 = inlined_call_operand.vmem [shape: f32[4,1,128], index: 2, kind: input, shape index: {}]   ;;  %s2845_s3 = inlined_call_operand.vmem [shape: f32[1,128], index: 3, kind: input, shape index: {}]   ;;  %s2846_s4 = inlined_call_operand.vmem [shape: f32[1,128], index: 4, kind: input, shape index: {}]   ;;  %s2847_s6 = inlined_call_operand.hbm [shape: bf16[128,128], index: 6, kind: input, shape index: {}]   ;;  %s2848_s7 = inlined_call_operand.vmem [shape: f32[1,128], index: 7, kind: input, shape index: {}]   ;;  %s2849_s8 = inlined_call_operand.hbm [shape: bf16[3,128,128], index: 8, kind: input, shape index: {}]   ;;  %s2850_s9 = inlined_call_operand.hbm [shape: bf16[3,128,128], index: 9, kind: input, shape index: {}]   ;;  %s2851_s10 = inlined_call_operand.vmem [shape: f32[3,1,128], index: 10, kind: input, shape index: {}]   ;;  %s2852_s11 = inlined_call_operand.vmem [shape: f32[3,1,128], index: 11, kind: input, shape index: {}]   ;;  %s2853_s12 = inlined_call_operand.hbm [shape: f32[4,1,128], index: 12, kind: output, shape index: {}]   ;;  %s2854_s5 = inlined_call_operand.<no memory space> [shape: f32[1,1], index: 5, kind: input, shape index: {}]  }
   0x1   :  { %2869 = sst [smem:[#allocation27_spill]] %s2844_s2  ;;  %s2046_s23 = scalar_lea.hbm %s2842_s0, 16 }
   0x2   :  { %2870 = sst [smem:[#allocation28_spill]] %s2845_s3  ;;  %p2047_p0 = scmp.ne.s32.totalorder %s2842_s0, %s2046_s23 }
   0x3   :  { %2871 = sst [smem:[#allocation29_spill]] %s2846_s4  ;;  %p2050_p1 = scmp.lt.u32.totalorder %s2046_s23, %s2842_s0 }
   0x4   :  { %2872 = sst [smem:[#allocation30_spill]] %s2847_s6 }
   0x5   :  { %2873 = sst [smem:[#allocation31_spill]] %s2848_s7  ;;  %p2052_p2 = pnand %p2050_p1, %p2047_p0 }
   0x6   :  { %2874 = sst [smem:[#allocation32_spill]] %s2849_s8 }
   0x7   :  { %2875 = sst [smem:[#allocation33_spill]] %s2850_s9 }
   0x8   :  { %2876 = sst [smem:[#allocation34_spill]] %s2851_s10 }
   0x9   :  { %2877 = sst [smem:[#allocation35_spill]] %s2852_s11 }
   0xa   :  { %2878 = sst [smem:[#allocation36_spill]] %s2853_s12 }
   0xb   :  { %2055 = shalt.err (!%p2052_p2)  }
   0xc   :  { %s2304_s28 = smov [#allocation6]   ;;  %v19_v0 = vstv %s2854_s5 }
   0xd   :  { %18 = dma.hbm_to_smem %s2842_s0, 16, %s2304_s28, [#allocation5]  ;;  %20 = vst [vmem:[#allocation7] sm:$0x1] %v19_v0 }
   0xe   :  { %2242 = dma.done.wait [#allocation5], 16 }
   0xf   :  { %2243 = vsyncadd [#allocation5], 4294967280 }
  0x10   :  { %22 = sfence }
  0x11   :  { %23 = vsyncpa [#allocation9], 0 }
  0x12   :  { %25 = vsyncpa [#allocation9 + $0x1], 0 }
  0x13   :  { %26 = vsyncpa [#allocation12], 0 }
  0x14   :  { %27 = vsyncpa [#allocation15], 0 }
  0x15   :  { %28 = vsyncpa [#allocation10], 0 }
  0x16   :  { %30 = vsyncpa [#allocation10 + $0x1], 0  ;;  %s2400_s15 = smov 0   ;;  %s2402_s16 = smov 0  }
  0x17   :  { %s2404_s17 = smov 0   ;;  %s2406_s0 = smov 0  }
  0x18   :  { %s2408_s18 = smov 0   ;;  %s2410_s5 = smov 0  }
  0x19   :  { %s2412_s19 = smov 0   ;;  %s2414_s20 = smov 0  }
  0x1a   :  { %s2416_s21 = smov 0   ;;  %s2418_s22 = smov 0  }
  0x1b   :  { %s2420_s23 = smov 0  }
  0x1c LB: > { %2879 = sst [smem:[#allocation22_spill]] %s2262_s15  ;;  %s1523_s24 = sadd.s32 4294967295, %s2302_s23   ;;  %s2302_s23 = sphi %s2420_s23, %s36_s23   ;;  %s2298_s22 = sphi %s2418_s22, %s2927_s22   ;;  %s2294_s21 = sphi %s2416_s21, %s2926_s21   ;;  %s2290_s20 = sphi %s2414_s20, %s2925_s20   ;;  %s2286_s19 = sphi %s2412_s19, %s2924_s19   ;;  %s2282_s5 = sphi %s2410_s5, %s2923_s5   ;;  %s2278_s18 = sphi %s2408_s18, %s2922_s18   ;;  %s2274_s0 = sphi %s2406_s0, %s2921_s0   ;;  %s2270_s17 = sphi %s2404_s17, %s2920_s17   ;;  %s2266_s16 = sphi %s2402_s16, %s2919_s16   ;;  %s2262_s15 = sphi %s2400_s15, %s2918_s15  }
  0x1d   : > { %2880 = sst [smem:[#allocation23_spill]] %s2286_s19  ;;  %s1524_s25 = sadd.s32 4294967294, %s2302_s23  }
  0x1e   : > { %p70_p3 = scmp.ne.s32.totalorder %s2278_s18, %s2274_s0  ;;  %p2456_p4 = scmp.eq.s32.totalorder %s1523_s24, 0 }
  0x1f   : > { %p308_p5 = scmp.ne.s32.totalorder %s2270_s17, %s2266_s16  ;;  %p309_p6 = scmp.eq.s32.totalorder %s1523_s24, 7 }
  0x20   : > { %s2881_s26 = scalar_select %p2456_p4, 1, 0 }
  0x21   : > { %p2464_p7 = por %p2456_p4, %p70_p3  ;;  %p314_p8 = scmp.ne.s32.totalorder %s2266_s16, %s2262_s15 }
  0x22   : > { %p2470_p9 = por %p309_p6, %p308_p5  ;;  %p315_p10 = scmp.eq.s32.totalorder %s1524_s25, 7 }
  0x23   : > { %s2882_s27 = scalar_select %p2464_p7, 1, 0 }
  0x24   : > { %s2883_s28 = scalar_select %p2470_p9, 1, 0 }
  0x25   : > { %p1525_p11 = scmp.ge.s32.totalorder %s2302_s23, 1  ;;  %p322_p12 = scmp.lt.s32.totalorder %s2302_s23, 9 }
  0x26   : > { %2884 = sst [smem:[#allocation24_spill]] %s2883_s28  ;;  %p2476_p13 = por %p315_p10, %p314_p8 }
  0x27   : > { %p2480_p0 = pnand %p1525_p11, %p322_p12  ;;  %s2305_s13 = smov [#allocation11]  }
  0x28   : > { %s2885_s29 = scalar_select %p2476_p13, 1, 0 }
  0x29   : > { %s2887_s30 = scalar_select %p2480_p0, 1, 0 }
  0x2a   : > { %2886 = sst [smem:[#allocation25_spill]] %s2885_s29  ;;  %s343_s14 = sshll.u32 %s2305_s13, 4  ;;  %s344_s14 = int_to_ptr.vmem [resolvable:$true] %s343_s14 }
  0x2b   : > { %p1841_p1 = pneg %p2480_p0  ;;  %s2306_s24 = smov [#allocation13]  }
  0x2c   : > { %s359_s25 = sshll.u32 %s2306_s24, 4  ;;  %s2889_s6 = sld [smem:[#allocation30_spill]]  ;;  %s2492_s25 = int_to_ptr.vmem [resolvable:$true] %s359_s25 }
  0x2d   : > { %p2488_p2 = pnand %p1841_p1, %p2456_p4 }
  0x2f   : > { %p2502_p5 = pneg %p2488_p2 }
  0x32   : > { %s2056_s12 = scalar_lea.hbm %s2889_s6, 1024 }
  0x33   : > { %p2057_p3 = scmp.ne.s32.totalorder %s2889_s6, %s2056_s12  ;;  %p2063_p10 = scmp.lt.u32.totalorder %s2056_s12, %s2889_s6 }
  0x35   : > { %p2059_p6 = pnand %p2502_p5, %p2057_p3 }
  0x37   : > { %p2060_p8 = pneg %p2059_p6 }
  0x39   : > { %p2065_p11 = pnand %p2063_p10, %p2060_p8 }
  0x3b   : > { %2068 = shalt.err (!%p2065_p11)
}
  0x3c   : > { %s2069_s15 = scalar_lea.vmem %s344_s14, 1024  ;;  %p2077_p9 = scmp.lt.s32.totalorder %s344_s14, %s344_s14 }
  0x3d   : > { %p2070_p12 = scmp.ne.s32.totalorder %s344_s14, %s2069_s15  ;;  %p2078_p4 = scmp.lt.s32.totalorder %s2069_s15, %s2069_s15 }
  0x3f   : > { %p2072_p1 = pnand %p2070_p12, %p2502_p5  ;;  %p2079_p7 = por %p2078_p4, %p2077_p9 }
  0x41   : > { %p2073_p13 = pneg %p2072_p1 }
  0x43   : > { %p2080_p0 = pnand %p2079_p7, %p2073_p13 }
  0x45   : > { %2083 = shalt.err (!%p2080_p0)
}
  0x46   : > { %s2307_s11 = smov 64   ;;  %s2308_s28 = smov 4  }
  0x47   : > { %1844 = dma.hbm_to_vmem [thread:$0]  (!%p2488_p2), %s2889_s6, 1024, %s344_s14, [#allocation12], %s2307_s11, %s2307_s11, %s2308_s28  }
  0x48   : > { %s2891_s8 = sld [smem:[#allocation32_spill]] }
  0x4e   : > { %s2084_s7 = scalar_lea.hbm %s2891_s8, 3072 }
  0x4f   : > { %p2085_p4 = scmp.ne.s32.totalorder %s2891_s8, %s2084_s7  ;;  %p2091_p13 = scmp.lt.u32.totalorder %s2084_s7, %s2891_s8 }
  0x51   : > { %p2087_p7 = pnand %p2085_p4, %p2502_p5 }
  0x53   : > { %p2088_p9 = pneg %p2087_p7 }
  0x55   : > { %p2093_p0 = pnand %p2091_p13, %p2088_p9 }
  0x57   : > { %2096 = shalt.err (!%p2093_p0)
}
  0x58   : > { %s2097_s14 = scalar_lea.vmem %s2492_s25, 3072  ;;  %p2105_p10 = scmp.lt.s32.totalorder %s2492_s25, %s2492_s25 }
  0x59   : > { %p2098_p3 = scmp.ne.s32.totalorder %s2492_s25, %s2097_s14  ;;  %p2106_p11 = scmp.lt.s32.totalorder %s2097_s14, %s2097_s14 }
  0x5b   : > { %p2100_p6 = pnand %p2098_p3, %p2502_p5  ;;  %p2107_p12 = por %p2106_p11, %p2105_p10 }
  0x5d   : > { %p2101_p8 = pneg %p2100_p6 }
  0x5f   : > { %p2108_p1 = pnand %p2107_p12, %p2101_p8 }
  0x61   : > { %2111 = shalt.err (!%p2108_p1)
}
  0x62   : > { %1847 = dma.hbm_to_vmem [thread:$0]  (!%p2488_p2), %s2891_s8, 3072, %s2492_s25, [#allocation12], %s2307_s11, %s2307_s11, %s2308_s28  }
  0x63   : > { %s2309_s7 = smov [#allocation14]   ;;  %s2892_s9 = sld [smem:[#allocation33_spill]] }
  0x64   : > { %s372_s19 = sshll.u32 %s2309_s7, 4  ;;  %s373_s19 = int_to_ptr.vmem [resolvable:$true] %s372_s19 }
  0x69   : > { %s2112_s29 = scalar_lea.hbm %s2892_s9, 3072 }
  0x6a   : > { %p2113_p4 = scmp.ne.s32.totalorder %s2892_s9, %s2112_s29  ;;  %p2119_p13 = scmp.lt.u32.totalorder %s2112_s29, %s2892_s9 }
  0x6c   : > { %p2115_p7 = pnand %p2113_p4, %p2502_p5 }
  0x6e   : > { %p2116_p9 = pneg %p2115_p7 }
  0x70   : > { %p2121_p0 = pnand %p2119_p13, %p2116_p9 }
  0x72   : > { %2124 = shalt.err (!%p2121_p0)
}
  0x73   : > { %s2125_s25 = scalar_lea.vmem %s373_s19, 3072  ;;  %p2133_p10 = scmp.lt.s32.totalorder %s373_s19, %s373_s19 }
  0x74   : > { %p2126_p3 = scmp.ne.s32.totalorder %s373_s19, %s2125_s25  ;;  %p2134_p11 = scmp.lt.s32.totalorder %s2125_s25, %s2125_s25 }
  0x76   : > { %p2128_p6 = pnand %p2126_p3, %p2502_p5  ;;  %p2135_p12 = por %p2134_p11, %p2133_p10 }
  0x78   : > { %p2129_p8 = pneg %p2128_p6 }
  0x7a   : > { %p2136_p1 = pnand %p2135_p12, %p2129_p8 }
  0x7c   : > { %2139 = shalt.err (!%p2136_p1)
}
  0x7d   : > { %1850 = dma.hbm_to_vmem [thread:$0]  (!%p2488_p2), %s2892_s9, 3072, %s373_s19, [#allocation15], %s2307_s11, %s2307_s11, %s2308_s28  }
  0x7e   : > { %s45_s13 = sadd.s32 1, %s2294_s21  ;;  %s48_s0 = sadd.s32 1, %s2298_s22 }
  0x7f   : > { %p46_p5 = scmp.ge.s32.totalorder %s45_s13, 2  ;;  %s57_s4 = sadd.s32 1, %s2282_s5 }
  0x80   : > { %p64_p4 = scmp.ne.s32.totalorder %s2282_s5, %s2278_s18  ;;  %p65_p7 = scmp.eq.s32.totalorder %s2302_s23, 0 }
  0x81   : > { %s2929_s13 = smov (%p46_p5, %s45_s13), 0  ;;  %s2931_s0 = smov (!%p46_p5, %s48_s0), %s2298_s22 }
  0x82   : > { %2893 = sst [smem:[#allocation26_spill]] %s2929_s13  ;;  %s53_s7 = ssub.s32 %s2294_s21, %s2929_s13 }
  0x83   : > { %p2579_p9 = por %p65_p7, %p64_p4  ;;  %p50_p2 = scmp.ge.s32.totalorder %s2931_s0, 4 }
  0x84   : > { %s298_s11 = sadd.s32 1, %s2270_s17  ;;  %p1862_p13 = scmp.lt.s32.totalorder %s2302_s23, 8 }
  0x85   : > { %s392_s28 = sand.u32 1, %s2282_s5   ;;  %s2933_s0 = smov (%p50_p2, %s2931_s0), 0 }
  0x86   : > { %s1530_s19 = sshll.u32 %s392_s28, 2  ;;  %s52_s12 = ssub.s32 %s2298_s22, %s2933_s0 }
  0x87   : > { %s54_s29 = sor.u32 %s53_s7, %s52_s12  ;;  %p296_p0 = scmp.eq.s32.totalorder %s52_s12, 0 }
  0x88   : > { %p55_p3 = scmp.eq.s32.totalorder %s54_s29, 0  ;;  %s1531_s24 = sshll.u32 %s2298_s22, 1 }
  0x89   : > { %s2592_s15 = scalar_select %p296_p0, %s2270_s17, %s298_s11  }
  0x8a   : > { %s2595_s14 = scalar_select %p55_p3, %s2282_s5, %s57_s4  }
  0x8b   : > { %s401_s25 = sadd.s32 %s2294_s21, %s1531_s24  ;;  %s396_s6 = scalar_lea.vmem [#allocation8], %s1530_s19 }
  0x8c   : > { %s405_s3 = sshll.u32 %s396_s6, 4  ;;  %s1532_s8 = sshll.u32 %s401_s25, 6  ;;  %s2598_s3 = int_to_ptr.vmem [resolvable:$true] %s405_s3 }
  0x8d   : > { %s2603_s2 = scalar_lea.hbm %s2843_s1, %s1532_s8  ;;  %p2609_p6 = pnand %p1862_p13, %p2579_p9 }
  0x8e   : > { %s393_s7 = scalar_lea.sflag [#allocation9], %s392_s28  ;;  %s2140_s11 = scalar_lea.hbm %s2603_s2, 64 }
  0x8f   : > { %p2141_p8 = scmp.ne.s32.totalorder %s2603_s2, %s2140_s11  ;;  %p2142_p10 = pneg %p2609_p6 }
  0x90   : > { %s2145_s13 = scalar_lea.hbm %s2843_s1, 512  ;;  %p2146_p1 = scmp.lt.u32.totalorder %s2603_s2, %s2843_s1 }
  0x91   : > { %p2143_p11 = pnand %p2142_p10, %p2141_p8  ;;  %p2147_p5 = scmp.lt.u32.totalorder %s2145_s13, %s2140_s11 }
  0x92   : > { %p2149_p7 = scmp.lt.u32.totalorder %s2140_s11, %s2603_s2 }
  0x93   : > { %p2144_p12 = pneg %p2143_p11  ;;  %p2148_p4 = por %p2147_p5, %p2146_p1 }
  0x95   : > { %p2150_p9 = por %p2149_p7, %p2148_p4 }
  0x97   : > { %p2151_p2 = pnand %p2150_p9, %p2144_p12 }
  0x99   : > { %2154 = shalt.err (!%p2151_p2)
}
  0x9a   : > { %s2155_s28 = scalar_lea.vmem %s2598_s3, 64  ;;  %s2310_s12 = smov [#allocation8]  }
  0x9b   : > { %p2156_p13 = scmp.ne.s32.totalorder %s2598_s3, %s2155_s28  ;;  %s2160_s29 = sshll.u32 %s2310_s12, 4  ;;  %s2161_s29 = int_to_ptr.vmem [resolvable:$false] %s2160_s29 }
  0x9c   : > { %s2162_s24 = scalar_lea.vmem %s2161_s29, 128  ;;  %p2163_p8 = scmp.lt.s32.totalorder %s2598_s3, %s2161_s29 }
  0x9d   : > { %p2158_p0 = pnand %p2156_p13, %p2142_p10  ;;  %p2164_p11 = scmp.lt.s32.totalorder %s2162_s24, %s2155_s28 }
  0x9f   : > { %p2159_p3 = pneg %p2158_p0  ;;  %p2165_p1 = por %p2164_p11, %p2163_p8 }
  0xa1   : > { %p2166_p5 = pnand %p2165_p1, %p2159_p3 }
  0xa3   : > { %2169 = shalt.err (!%p2166_p5)
}
  0xa4   : > { %1854 = dma.hbm_to_vmem [thread:$0]  (!%p2609_p6), %s2603_s2, 64, %s2598_s3, %s393_s7  }
  0xa5   : > { %p2896_p12 = scmp.ne.s32.totalorder %s2887_s30, 0 }
  0xa6   : > { %s422_s25 = sand.u32 (!%p2896_p12), 1, %s2278_s18   ;;  %p2897_p10 = scmp.ne.s32.totalorder (!%p2896_p12), %s2882_s27, 0 }
  0xa7   : > { %420 = sbr.rel (%p2896_p12) target bundleno = 932 (0x3a4), region = 64  ;;  %s1534_s6 = sshll.u32 (!%p2896_p12), %s422_s25, 2 }
  0xa8   : > { %s423_s11 = scalar_lea.sflag (!%p2896_p12), [#allocation9], %s422_s25  ;;  %s426_s8 = scalar_lea.vmem (!%p2896_p12), [#allocation8], %s1534_s6 }
  0xae   : > { %2245 = dma.done.wait (%p2897_p10), %s423_s11, 64  }
  0xaf   : > { %2247 = vsyncadd (%p2897_p10), %s423_s11, 4294967232  ;;  %p2898_p4 = scmp.ne.s32.totalorder %s2881_s26, 0 }
  0xb1   : > { %2249 = dma.done.wait (%p2898_p4), [#allocation12], 4096  }
  0xb2   : > { %2251 = vsyncadd (%p2898_p4), [#allocation12], 4294963200 }
  0xb3   : > { %2253 = dma.done.wait (%p2898_p4), [#allocation15], 3072  }
  0xb4   : > { %2255 = vsyncadd (%p2898_p4), [#allocation15], 4294964224  ;;  %s477_s2 = sand.u32 1, %s2266_s16   ;;  %p479_p6 = scmp.lt.s32.totalorder %s2290_s20, 3 }
  0xb5   : > { %s2899_s4 = sld [smem:[#allocation27_spill]]  ;;  %s2661_s9 = scalar_lea.vmem [#allocation16], %s477_s2 }
  0xb6   : > { %s480_s27 = scalar_select %p479_p6, %s2290_s20, 3 }
  0xb7   : > { %s2900_s13 = sld [smem:[#allocation23_spill]] }
  0xbb   : > { %s481_s7 = scalar_lea.vmem %s2899_s4, %s480_s27 }
  0xbd   : > { %p1538_p7 = scmp.ne.s32.totalorder %s2900_s13, 0 }
  0xbe   : > { %vm487_vm0 = vcmask (!%p1538_p7), 0   ;;  %v2311_v1 = vmov (!%p1538_p7), -1e+30   ;;  %v2312_v2 = vmov (!%p1538_p7), 0.0  }
  0xbf   : > { %486 = sbr.rel (%p1538_p7) target bundleno = 198 (0xc6), region = 84  ;;  %488 = vst.msk [vmem:[#allocation2] sm:$0x1] (!%p1538_p7), %vm487_vm0, %v2311_v1  ;;  %489 = vst.msk [vmem:[#allocation3] sm:$0x1] (!%p1538_p7), %vm487_vm0, %v2312_v2 }
  0xc0   : > { %490 = vst [vmem:[#allocation4] sm:$0x1] (!%p1538_p7), %v2312_v2 }
  0xc6 PF: > { %v2664_v3 = vld [vmem:[%s481_s7] sm:$0x1]  ;;  %s2901_s19 = sld [smem:[#allocation29_spill]]  ;;  %vm505_vm1 = vcmask 1040384   ;;  %v491_v6 = vld [vmem:[%s426_s8] sm:$0xf]  ;;  %v495_v22 = vlaneseq }
  0xc7   : > { %v502_v5 = vmax.f32 %v2664_v3, 0.0  ;;  %s2902_s29 = sld [smem:[#allocation28_spill]]  ;;  %v2313_v8 = vmov 0.0   ;;  %v1971_v9 = vld [vmem:[#allocation11] sm:$0xff]   ;;  %v492_v10 = vunpack.c.l.bf16 %v491_v6  ;;  %v1972_v12 = vld [vmem:[#allocation11 + $0x8] sm:$0xff]   ;;  %vm2314_vm2 = vmmov 0  }
  0xc8   : > { %1673 = vmatprep.subr.bf16.mxu0 %v2313_v8  ;;  %1689 = vmatprep.mubr.msk.bf16.mxu0 %vm2314_vm2, %v2313_v8  ;;  %v1973_v15 = vld [vmem:[#allocation11 + $0x10] sm:$0xff]   ;;  %v1974_v16 = vld [vmem:[#allocation11 + $0x18] sm:$0xff]   ;;  %v1975_v17 = vld [vmem:[#allocation11 + $0x20] sm:$0xff]   ;;  %s2903_s24 = sld [smem:[#allocation23_spill]]  ;;  %v2315_v21 = vmov 0   ;;  %v496_v23 = vshrl.u32 %v495_v22, 7 }
  0xc9   : > { %1674 = vmatpush3.bf16.msra.mxu0 %v1971_v9  ;;  %v1976_v18 = vld [vmem:[#allocation11 + $0x28] sm:$0xff]   ;;  %v1977_v19 = vld [vmem:[#allocation11 + $0x30] sm:$0xff]   ;;  %v1978_v20 = vld [vmem:[#allocation11 + $0x38] sm:$0xff]   ;;  %1969 = vset.pattern.permute.xlu1 %v2315_v21  ;;  %s494_s25 = sld [smem:[#allocation6 + %s2290_s20]]  ;;  %vm648_vm5 = vcmask 7168   ;;  %vm680_vm6 = vcmask 0  }
  0xca   : > { %1675 = vmatprep.subr.bf16.mxu0 %v2313_v8  ;;  %1970 = vset.pattern.permute.xlu0 %v2315_v21  ;;  %v2674_v24 = vsub.s32 0, %v496_v23  ;;  %v1541_v28 = vld [vmem:[#allocation7] ss:$0 sm:$0xff]  ;;  %v647_v44 = vld [vmem:[#allocation2] sm:$0x1]  ;;  %s2906_s27 = sld [smem:[#allocation31_spill]] }
  0xcb   : > { %v670_v60 = vld [vmem:[#allocation3] sm:$0x1] }
  0xcc   : > { %v503_v4 = vld [vmem:[%s2901_s19] sm:$0x1] }
  0xcd   : > { %v1540_v7 = vld [vmem:[%s2902_s29] ss:$0 sm:$0xff]  ;;  %v504_v11 = vmul.f32 %v503_v4, %v502_v5  ;;  %1676 = vmatpush3.bf16.msra.mxu0 %v1972_v12 }
  0xce   : > { %v516_v14 = vmul.f32 %v1540_v7, %v492_v10  ;;  %1677 = vmatprep.subr.bf16.mxu0 %v2313_v8  ;;  %s1539_s6 = sshll.u32 %s2903_s24, 3  ;;  %p1551_p9 = scmp.ne.s32.totalorder %s2903_s24, 1 }
  0xcf   : > { %v506_v13 = vsel %vm505_vm1, %v504_v11, 0.0  ;;  %v498_v26 = vstv %s1539_s6  ;;  %v500_v32 = vstv %s494_s25  ;;  %v2316_v22 = vmov (!%p1551_p9), 0   ;;  %v1994_v35 = vld [vmem:[#allocation13 + $0x28] sm:$0xff] (!%p1551_p9)   ;;  %s2907_s4 = sld [smem:[#allocation34_spill]] (!%p1551_p9)  ;;  %s2908_s26 = sld [smem:[#allocation35_spill]] (!%p1551_p9) }
  0xd0   : > { %507 = vadd.xlane.f32.xlu0 %v506_v13  ;;  %v499_v31 = vadd.s32 %v498_v26, %v496_v23  ;;  %v1984_v23 = vld [vmem:[#allocation13] sm:$0xff] (!%p1551_p9)   ;;  %v2317_v26 = vmov (!%p1551_p9), 0.0   ;;  %vm2318_vm7 = vmmov (!%p1551_p9), 0  }
  0xd1   : > { %1678 = vmatpush3.bf16.msra.mxu0 %v1973_v15  ;;  %1983 = vset.pattern.permute.xlu0 (!%p1551_p9), %v2316_v22 }
  0xd2   : > { %1679 = vmatprep.subr.bf16.mxu0 %v2313_v8  ;;  %vm2678_vm3 = vcmp.lt.s32.totalorder %v499_v31, %v500_v32  ;;  %1713 = vmatprep.subr.bf16.mxu1 (!%p1551_p9), %v2317_v26  ;;  %v1990_v31 = vld [vmem:[#allocation13 + $0x18] sm:$0xff] (!%p1551_p9)  }
  0xd3   : > { %1729 = vmatprep.mubr.msk.bf16.mxu1 (!%p1551_p9), %vm2318_vm7, %v2317_v26  ;;  %v1991_v32 = vld [vmem:[#allocation13 + $0x58] sm:$0xff] (!%p1551_p9)  }
  0xd4   : > { %517 = vadd.xlane.f32.xlu0 %v516_v14 }
  0xd5   : > { %1680 = vmatpush3.bf16.msra.mxu0 %v1974_v16  ;;  %v682_v16 = vld [vmem:[#allocation4] sm:$0x1] }
  0xd6   : > { %1681 = vmatprep.subr.bf16.mxu0 %v2313_v8 }
  0xd9   : > { %1682 = vmatpush3.bf16.msra.mxu0 %v1975_v17 }
  0xda   : > { %1683 = vmatprep.subr.bf16.mxu0 %v2313_v8 }
  0xdd   : > { %1684 = vmatpush3.bf16.msra.mxu0 %v1976_v18 }
  0xde   : > { %1685 = vmatprep.subr.bf16.mxu0 %v2313_v8 }
  0xe1   : > { %1686 = vmatpush3.bf16.msra.mxu0 %v1977_v19 }
  0xe2   : > { %1687 = vmatprep.subr.bf16.mxu0 %v2313_v8 }
  0xe5   : > { %1688 = vmatpush3.bf16.msra.mxu0 %v1978_v20 }
  0xe6   : > { %1693 = vmatprep.subr.bf16.mxu0 (!%p1551_p9), %v2317_v26 }
  0xe8   : > { %1690 = vmatmul.mubr.bf16.vlgmr.msra.gmra.mrb[0].mxu0 %v491_v6  ;;  %v1542_v6 = vld [vmem:[%s2906_s27] ss:$0 sm:$0xff] }
  0xe9   : > { %1694 = vmatpush3.bf16.msra.mxu0 (!%p1551_p9), %v1984_v23  ;;  %1709 = vmatprep.mubr.msk.bf16.mxu0 (!%p1551_p9), %vm2318_vm7, %v2317_v26 }
  0xea   : > { %1695 = vmatprep.subr.bf16.mxu0 (!%p1551_p9), %v2317_v26 }
 0x15d   : > { %v508_v25 = vpop.xlane.xlu0 %507 }
 0x15e   : > { %v522_v27 = vrot.slane %v508_v25, %v2674_v24  ;;  %v1985_v25 = vld [vmem:[#allocation13 + $0x40] sm:$0xff] (!%p1551_p9)  }
 0x15f   : > { %1714 = vmatpush3.bf16.msra.mxu1 (!%p1551_p9), %v1985_v25 }
 0x160   : > { %1715 = vmatprep.subr.bf16.mxu1 (!%p1551_p9), %v2317_v26 }
 0x161   : > { %v518_v29 = vpop.xlane.xlu0 %517 }
 0x162   : > { %v523_v30 = vadd.f32 %v522_v27, %v518_v29  ;;  %v1986_v27 = vld [vmem:[#allocation13 + $0x8] sm:$0xff] (!%p1551_p9)   ;;  %v1988_v29 = vld [vmem:[#allocation13 + $0x10] sm:$0xff] (!%p1551_p9)  }
 0x163   : > { %1696 = vmatpush3.bf16.msra.mxu0 (!%p1551_p9), %v1986_v27 }
 0x164   : > { %v531_v33 = vadd.f32 %v1541_v28, %v523_v30  ;;  %v1987_v28 = vld [vmem:[#allocation13 + $0x48] sm:$0xff] (!%p1551_p9)   ;;  %v1989_v30 = vld [vmem:[#allocation13 + $0x50] sm:$0xff] (!%p1551_p9)   ;;  %1697 = vmatprep.subr.bf16.mxu0 (!%p1551_p9), %v2317_v26 }
 0x165   : > { %1716 = vmatpush3.bf16.msra.mxu1 (!%p1551_p9), %v1987_v28 }
 0x166   : > { %v533_v34 = vmul.f32 0.01, %v531_v33  ;;  %vm532_vm4 = vcmp.gt.f32.partialorder %v531_v33, 0.0  ;;  %1717 = vmatprep.subr.bf16.mxu1 (!%p1551_p9), %v2317_v26 }
 0x167   : > { %1698 = vmatpush3.bf16.msra.mxu0 (!%p1551_p9), %v1988_v29 }
 0x168   : > { %v534_v36 = vsel %vm532_vm4, %v531_v33, %v533_v34  ;;  %1699 = vmatprep.subr.bf16.mxu0 (!%p1551_p9), %v2317_v26  ;;  %v1992_v33 = vld [vmem:[#allocation13 + $0x20] sm:$0xff] (!%p1551_p9)  }
 0x169   : > { %v535_v37 = vsel %vm2678_vm3, %v534_v36, -1e+30  ;;  %1718 = vmatpush3.bf16.msra.mxu1 (!%p1551_p9), %v1989_v30  ;;  %v1993_v34 = vld [vmem:[#allocation13 + $0x60] sm:$0xff] (!%p1551_p9)   ;;  %v1995_v36 = vld [vmem:[#allocation13 + $0x68] sm:$0xff] (!%p1551_p9)  }
 0x16a   : > { %v649_v38 = vsel %vm648_vm5, %v535_v37, -inf  ;;  %1719 = vmatprep.subr.bf16.mxu1 (!%p1551_p9), %v2317_v26 }
 0x16b   : > { %v650_v39 = vrot.slane %v649_v38, 4  ;;  %1700 = vmatpush3.bf16.msra.mxu0 (!%p1551_p9), %v1990_v31  ;;  %v749_v31 = vld [vmem:[%s2907_s4] sm:$0x1] (!%p1551_p9) }
 0x16c   : > { %1701 = vmatprep.subr.bf16.mxu0 (!%p1551_p9), %v2317_v26 }
 0x16d   : > { %v651_v40 = vmax.f32 %v649_v38, %v650_v39  ;;  %1720 = vmatpush3.bf16.msra.mxu1 (!%p1551_p9), %v1991_v32  ;;  %v1997_v38 = vld [vmem:[#allocation13 + $0x70] sm:$0xff] (!%p1551_p9)   ;;  %v1998_v39 = vld [vmem:[#allocation13 + $0x38] sm:$0xff] (!%p1551_p9)  }
 0x16e   : > { %1721 = vmatprep.subr.bf16.mxu1 (!%p1551_p9), %v2317_v26  ;;  %v1561_v32 = vld [vmem:[%s2907_s4 + $0x1] sm:$0x1] (!%p1551_p9) }
 0x16f   : > { %v652_v41 = vrot.slane %v651_v40, 2  ;;  %1702 = vmatpush3.bf16.msra.mxu0 (!%p1551_p9), %v1992_v33  ;;  %v1587_v33 = vld [vmem:[%s2908_s26 + $0x1] sm:$0x1] (!%p1551_p9) }
 0x170   : > { %1703 = vmatprep.subr.bf16.mxu0 (!%p1551_p9), %v2317_v26 }
 0x171   : > { %v653_v42 = vmax.f32 %v651_v40, %v652_v41  ;;  %1722 = vmatpush3.bf16.msra.mxu1 (!%p1551_p9), %v1993_v34  ;;  %v1999_v40 = vld [vmem:[#allocation13 + $0x78] sm:$0xff] (!%p1551_p9)  }
 0x172   : > { %1723 = vmatprep.subr.bf16.mxu1 (!%p1551_p9), %v2317_v26 }
 0x173   : > { %v654_v43 = vrot.slane %v653_v42, 1  ;;  %1704 = vmatpush3.bf16.msra.mxu0 (!%p1551_p9), %v1994_v35  ;;  %v1815_v35 = vadd.f32 (!%p1551_p9), %v1587_v33, %v1561_v32 }
 0x174   : > { %1705 = vmatprep.subr.bf16.mxu0 (!%p1551_p9), %v2317_v26 }
 0x175   : > { %v655_v45 = vmax.f32 %v653_v42, %v654_v43  ;;  %1724 = vmatpush3.bf16.msra.mxu1 (!%p1551_p9), %v1995_v36 }
 0x176   : > { %1725 = vmatprep.subr.bf16.mxu1 (!%p1551_p9), %v2317_v26 }
 0x177   : > { %v656_v46 = vmax.f32 %v647_v44, %v655_v45 }
 0x179   : > { %v664_v47 = vrot.slane %v656_v46, %v2674_v24  ;;  %707 = vst.msk [vmem:[#allocation2] sm:$0x1] %vm680_vm6, %v656_v46  ;;  %v657_v49 = vsub.f32 %v647_v44, %v656_v46  ;;  %1726 = vmatpush3.bf16.msra.mxu1 (!%p1551_p9), %v1997_v38 }
 0x17a   : > { %1727 = vmatprep.subr.bf16.mxu1 (!%p1551_p9), %v2317_v26 }
 0x17b   : > { %v666_v48 = vsub.f32 %v535_v37, %v664_v47  ;;  %v658_v51 = vmul.f32 1.442695, %v657_v49  ;;  %v1996_v37 = vld [vmem:[#allocation13 + $0x30] sm:$0xff] (!%p1551_p9)  }
 0x17c   : > { %1706 = vmatpush3.bf16.msra.mxu0 (!%p1551_p9), %v1996_v37 }
 0x17d   : > { %v667_v50 = vmul.f32 1.442695, %v666_v48  ;;  %1707 = vmatprep.subr.bf16.mxu0 (!%p1551_p9), %v2317_v26  ;;  %1728 = vmatpush3.bf16.msra.mxu1 (!%p1551_p9), %v1999_v40 }
 0x17e   : > { %1773 = vmatprep.subr.bf16.mxu1 (!%p1551_p9), %v2317_v26 }
 0x17f   : > { %1979 = vpow2.f32 %v667_v50 }
 0x180   : > { %1981 = vpow2.f32 %v658_v51  ;;  %1708 = vmatpush3.bf16.msra.mxu0 (!%p1551_p9), %v1998_v39  ;;  %v2000_v51 = vld [vmem:[#allocation13 + $0x80] sm:$0xff] (!%p1551_p9)  }
 0x181   : > { %1733 = vmatprep.subr.bf16.mxu0 (!%p1551_p9), %v2317_v26 }
 0x189   : > { %v1980_v52 = vpop.eup %1979 }
 0x18a   : > { %v669_v53 = vsel %vm2678_vm3, %v1980_v52, 0.0  ;;  %v1982_v56 = vpop.eup %1981  ;;  %v2001_v52 = vld [vmem:[#allocation14 + $0x40] sm:$0xff] (!%p1551_p9)  }
 0x18b   : > { %695 = vperm.xlu1 %1969, %v669_v53   ;;  %v672_v54 = vsel %vm648_vm5, %v669_v53, 0.0  ;;  %v671_v62 = vmul.f32 %v1982_v56, %v670_v60  ;;  %v2009_v60 = vld [vmem:[#allocation14 + $0x60] sm:$0xff] (!%p1551_p9)  }
 0x18c   : > { %v673_v55 = vrot.slane %v672_v54, 4 }
 0x18e   : > { %v674_v57 = vadd.f32 %v673_v55, %v672_v54  ;;  %v2002_v54 = vld [vmem:[#allocation13 + $0x88] sm:$0xff] (!%p1551_p9)   ;;  %v2004_v55 = vld [vmem:[#allocation13 + $0x90] sm:$0xff] (!%p1551_p9)  }
 0x18f   : > { %685 = vperm.xlu1 %1969, %v1982_v56   ;;  %v2005_v56 = vld [vmem:[#allocation14 + $0x50] sm:$0xff] (!%p1551_p9)  }
 0x190   : > { %v675_v58 = vrot.slane %v674_v57, 2 }
 0x192   : > { %v676_v59 = vadd.f32 %v675_v58, %v674_v57  ;;  %v2006_v57 = vld [vmem:[#allocation13 + $0x98] sm:$0xff] (!%p1551_p9)  }
 0x193   : > { %v2007_v58 = vld [vmem:[#allocation14 + $0x58] sm:$0xff] (!%p1551_p9)  }
 0x194   : > { %v677_v61 = vrot.slane %v676_v59, 1 }
 0x196   : > { %v678_v63 = vadd.f32 %v677_v61, %v676_v59  ;;  %v2008_v59 = vld [vmem:[#allocation13 + $0xa0] sm:$0xff] (!%p1551_p9)   ;;  %v2010_v61 = vld [vmem:[#allocation13 + $0xa8] sm:$0xff] (!%p1551_p9)  }
 0x198   : > { %v679_v0 = vadd.f32 %v678_v63, %v671_v62  ;;  %v2011_v62 = vld [vmem:[#allocation14 + $0x68] sm:$0xff] (!%p1551_p9)   ;;  %v2012_v63 = vld [vmem:[#allocation13 + $0xb0] sm:$0xff] (!%p1551_p9)  }
 0x19a   : > { %681 = vst.msk [vmem:[#allocation3] sm:$0x1] %vm680_vm6, %v679_v0  ;;  %v2013_v0 = vld [vmem:[#allocation14 + $0x70] sm:$0xff] (!%p1551_p9)  }
 0x1a1   : > { %v713_v21 = vld [vmem:[#allocation3] sm:$0x1] (!%p1551_p9) }
 0x1a2   : > { %716 = vperm.xlu0 (!%p1551_p9), %1983, %v713_v21  }
 0x1bb   : > { %v641_v1 = vpop.f32.mrb[0].mxu0 }
 0x1bc   : > { %v1691_v2 = vpop.f32.mrb[1].mxu0  ;;  %v642_v7 = vadd.f32 %v1542_v6, %v641_v1  ;;  %v2014_v1 = vld [vmem:[#allocation13 + $0xb8] sm:$0xff] (!%p1551_p9)   ;;  %v2022_v6 = vld [vmem:[#allocation14 + $0x80] sm:$0xff] (!%p1551_p9)  }
 0x1bd   : > { %v644_v4 = vpop.f32.mrb[2].mxu0  ;;  %v2015_v2 = vld [vmem:[#allocation14 + $0x78] sm:$0xff] (!%p1551_p9)  }
 0x1be   : > { %v1692_v5 = vpop.f32.mrb[3].mxu0  ;;  %v732_v4 = vpack.c.bf16 (!%p1551_p9), %v2664_v3, %v2664_v3 }
 0x1bf   : > { %v2016_v5 = vld [vmem:[#allocation14] sm:$0xff] (!%p1551_p9)  }
 0x20a   : > { %v696_v8 = vpop.permute.xlu1 %695 }
 0x20b   : > { %v698_v9 = vmul.f32 %v696_v8, %v642_v7  ;;  %v2017_v7 = vld [vmem:[#allocation14 + $0x8] sm:$0xff] (!%p1551_p9)  }
 0x20c   : > { %v2024_v8 = vld [vmem:[#allocation14 + $0x88] sm:$0xff] (!%p1551_p9)  }
 0x20d   : > { %v699_v10 = vrot.slane %v698_v9, 4 }
 0x20e   : > { %v686_v12 = vpop.permute.xlu1 %685 }
 0x20f   : > { %v700_v11 = vadd.f32 %v699_v10, %v698_v9  ;;  %v691_v15 = vrot.slane %v686_v12, %v2674_v24  ;;  %v2018_v9 = vld [vmem:[#allocation14 + $0x10] sm:$0xff] (!%p1551_p9)   ;;  %v2027_v12 = vld [vmem:[#allocation14 + $0x98] sm:$0xff] (!%p1551_p9)  }
 0x210   : > { %v2026_v10 = vld [vmem:[#allocation14 + $0x90] sm:$0xff] (!%p1551_p9)  }
 0x211   : > { %v701_v13 = vrot.slane %v700_v11, 2  ;;  %v692_v19 = vmul.f32 %v691_v15, %v682_v16  ;;  %v2021_v15 = vld [vmem:[#allocation14 + $0x28] sm:$0xff] (!%p1551_p9)  }
 0x212   : > { %v2029_v16 = vld [vmem:[#allocation14 + $0xa8] sm:$0xff] (!%p1551_p9)  }
 0x213   : > { %v702_v14 = vadd.f32 %v701_v13, %v700_v11  ;;  %v2019_v11 = vld [vmem:[#allocation14 + $0x18] sm:$0xff] (!%p1551_p9)   ;;  %v2020_v13 = vld [vmem:[#allocation14 + $0x20] sm:$0xff] (!%p1551_p9)  }
 0x215   : > { %v703_v17 = vrot.slane %v702_v14, 1  ;;  %711 = sbr.rel (%p1551_p9) target bundleno = 905 (0x389), region = 88 }
 0x217   : > { %v704_v18 = vadd.f32 %v703_v17, %v702_v14  ;;  %v2028_v14 = vld [vmem:[#allocation14 + $0xa0] sm:$0xff] (!%p1551_p9)   ;;  %v2023_v17 = vld [vmem:[#allocation14 + $0x30] sm:$0xff] (!%p1551_p9)  }
 0x219   : > { %v705_v20 = vadd.f32 %v704_v18, %v692_v19  ;;  %v2030_v18 = vld [vmem:[#allocation14 + $0xb0] sm:$0xff] (!%p1551_p9)   ;;  %v2025_v19 = vld [vmem:[#allocation14 + $0x38] sm:$0xff] (!%p1551_p9)  }
 0x21b   : > { %706 = vst [vmem:[#allocation4] sm:$0x1] %v705_v20  ;;  %v2031_v20 = vld [vmem:[#allocation14 + $0xb8] sm:$0xff] (!%p1551_p9)  }
 0x221   : > { %v717_v41 = vpop.permute.xlu0 %716 }
 0x222   : > { %v722_v42 = vrot.slane %v717_v41, %v2674_v24  ;;  %v712_v43 = vld [vmem:[#allocation4] sm:$0x1]  ;;  %v2003_v24 = vld [vmem:[#allocation14 + $0x48] sm:$0xff]  }
 0x224   : > { %2032 = vrcp.f32 %v722_v42 }
 0x22e   : > { %v2033_v44 = vpop.eup %2032 }
 0x22f   : > { %v724_v45 = vmul.f32 %v2033_v44, %v712_v43 }
 0x231   : > { %v726_v46 = vmin.f32 %v724_v45, 0.0  ;;  %vm725_vm8 = vcmp.gt.f32.partialorder %v724_v45, 0.0 }
 0x233   : > { %v727_v47 = vmul.f32 1.442695, %v726_v46 }
 0x235   : > { %2034 = vpow2.f32 %v727_v47 }
 0x23f   : > { %v2035_v48 = vpop.eup %2034 }
 0x240   : > { %v1552_v49 = vadd.f32 -1.0, %v2035_v48 }
 0x242   : > { %v730_v50 = vsel %vm725_vm8, %v724_v45, %v1552_v49 }
 0x243   : > { %v731_v53 = vpack.c.bf16 %v730_v50, %v730_v50 }
 0x245   : > { %1710 = vmatmul.mubr.bf16.vlgmr.msra.gmra.mrb[0].mxu0 %v731_v53  ;;  %1730 = vmatmul.mubr.bf16.vlgmr.msra.gmra.mrb[0].mxu1 %v731_v53 }
 0x246   : > { %1734 = vmatpush3.bf16.msra.mxu0 %v2000_v51  ;;  %1774 = vmatpush3.bf16.msra.mxu1 %v2001_v52  ;;  %v1596_v51 = vld [vmem:[%s2908_s26 + $0x2] sm:$0x1] }
 0x247   : > { %1735 = vmatprep.subr.bf16.mxu0 %v2317_v26  ;;  %1775 = vmatprep.subr.bf16.mxu1 %v2317_v26 }
 0x248   : > { %1749 = vmatprep.mubr.msk.bf16.mxu0 %vm2318_vm7, %v2317_v26  ;;  %1789 = vmatprep.mubr.msk.bf16.mxu1 %vm2318_vm7, %v2317_v26 }
 0x24a   : > { %1736 = vmatpush3.bf16.msra.mxu0 %v2002_v54  ;;  %1776 = vmatpush3.bf16.msra.mxu1 %v2003_v24  ;;  %v1570_v54 = vld [vmem:[%s2907_s4 + $0x2] sm:$0x1] }
 0x24b   : > { %1737 = vmatprep.subr.bf16.mxu0 %v2317_v26  ;;  %1777 = vmatprep.subr.bf16.mxu1 %v2317_v26 }
 0x24e   : > { %1738 = vmatpush3.bf16.msra.mxu0 %v2004_v55  ;;  %1778 = vmatpush3.bf16.msra.mxu1 %v2005_v56 }
 0x24f   : > { %1739 = vmatprep.subr.bf16.mxu0 %v2317_v26  ;;  %1779 = vmatprep.subr.bf16.mxu1 %v2317_v26 }
 0x252   : > { %1740 = vmatpush3.bf16.msra.mxu0 %v2006_v57  ;;  %1780 = vmatpush3.bf16.msra.mxu1 %v2007_v58 }
 0x253   : > { %1741 = vmatprep.subr.bf16.mxu0 %v2317_v26  ;;  %1781 = vmatprep.subr.bf16.mxu1 %v2317_v26 }
 0x256   : > { %1742 = vmatpush3.bf16.msra.mxu0 %v2008_v59  ;;  %1782 = vmatpush3.bf16.msra.mxu1 %v2009_v60 }
 0x257   : > { %1743 = vmatprep.subr.bf16.mxu0 %v2317_v26  ;;  %1783 = vmatprep.subr.bf16.mxu1 %v2317_v26 }
 0x25a   : > { %1744 = vmatpush3.bf16.msra.mxu0 %v2010_v61  ;;  %1784 = vmatpush3.bf16.msra.mxu1 %v2011_v62 }
 0x25b   : > { %1745 = vmatprep.subr.bf16.mxu0 %v2317_v26  ;;  %1785 = vmatprep.subr.bf16.mxu1 %v2317_v26 }
 0x25e   : > { %1746 = vmatpush3.bf16.msra.mxu0 %v2012_v63  ;;  %1786 = vmatpush3.bf16.msra.mxu1 %v2013_v0 }
 0x25f   : > { %1747 = vmatprep.subr.bf16.mxu0 %v2317_v26  ;;  %1787 = vmatprep.subr.bf16.mxu1 %v2317_v26 }
 0x262   : > { %1748 = vmatpush3.bf16.msra.mxu0 %v2014_v1  ;;  %1788 = vmatpush3.bf16.msra.mxu1 %v2015_v2 }
 0x263   : > { %1753 = vmatprep.subr.bf16.mxu0 %v2317_v26  ;;  %1793 = vmatprep.subr.bf16.mxu1 %v2317_v26 }
 0x265   : > { %1750 = vmatmul.mubr.bf16.vlgmr.msra.gmra.mrb[4].mxu0 %v731_v53  ;;  %1790 = vmatmul.mubr.bf16.vlgmr.msra.gmra.mrb[0].mxu1 %v732_v4 }
 0x266   : > { %1754 = vmatpush3.bf16.msra.mxu0 %v2016_v5  ;;  %1794 = vmatpush3.bf16.msra.mxu1 %v2022_v6 }
 0x267   : > { %1755 = vmatprep.subr.bf16.mxu0 %v2317_v26  ;;  %1795 = vmatprep.subr.bf16.mxu1 %v2317_v26 }
 0x268   : > { %1769 = vmatprep.mubr.msk.bf16.mxu0 %vm2318_vm7, %v2317_v26  ;;  %1809 = vmatprep.mubr.msk.bf16.mxu1 %vm2318_vm7, %v2317_v26 }
 0x26a   : > { %1756 = vmatpush3.bf16.msra.mxu0 %v2017_v7  ;;  %1796 = vmatpush3.bf16.msra.mxu1 %v2024_v8 }
 0x26b   : > { %1757 = vmatprep.subr.bf16.mxu0 %v2317_v26  ;;  %1797 = vmatprep.subr.bf16.mxu1 %v2317_v26 }
 0x26e   : > { %1758 = vmatpush3.bf16.msra.mxu0 %v2018_v9  ;;  %1798 = vmatpush3.bf16.msra.mxu1 %v2026_v10 }
 0x26f   : > { %1759 = vmatprep.subr.bf16.mxu0 %v2317_v26  ;;  %1799 = vmatprep.subr.bf16.mxu1 %v2317_v26 }
 0x272   : > { %1760 = vmatpush3.bf16.msra.mxu0 %v2019_v11  ;;  %1800 = vmatpush3.bf16.msra.mxu1 %v2027_v12 }
 0x273   : > { %1761 = vmatprep.subr.bf16.mxu0 %v2317_v26  ;;  %1801 = vmatprep.subr.bf16.mxu1 %v2317_v26 }
 0x276   : > { %1762 = vmatpush3.bf16.msra.mxu0 %v2020_v13  ;;  %1802 = vmatpush3.bf16.msra.mxu1 %v2028_v14 }
 0x277   : > { %1763 = vmatprep.subr.bf16.mxu0 %v2317_v26  ;;  %1803 = vmatprep.subr.bf16.mxu1 %v2317_v26 }
 0x27a   : > { %1764 = vmatpush3.bf16.msra.mxu0 %v2021_v15  ;;  %1804 = vmatpush3.bf16.msra.mxu1 %v2029_v16 }
 0x27b   : > { %1765 = vmatprep.subr.bf16.mxu0 %v2317_v26  ;;  %1805 = vmatprep.subr.bf16.mxu1 %v2317_v26 }
 0x27e   : > { %1766 = vmatpush3.bf16.msra.mxu0 %v2023_v17  ;;  %1806 = vmatpush3.bf16.msra.mxu1 %v2030_v18 }
 0x27f   : > { %1767 = vmatprep.subr.bf16.mxu0 %v2317_v26  ;;  %1807 = vmatprep.subr.bf16.mxu1 %v2317_v26  ;;  %v1068_v26 = vld [vmem:[%s2908_s26] sm:$0x1] }
 0x280   : > { %v1813_v34 = vadd.f32 %v1068_v26, %v749_v31 }
 0x282   : > { %1768 = vmatpush3.bf16.msra.mxu0 %v2025_v19  ;;  %1808 = vmatpush3.bf16.msra.mxu1 %v2031_v20 }
 0x285   : > { %1770 = vmatmul.mubr.bf16.vlgmr.msra.gmra.mrb[0].mxu0 %v732_v4  ;;  %1810 = vmatmul.mubr.bf16.vlgmr.msra.gmra.mrb[4].mxu1 %v732_v4 }
 0x338   : > { %v1046_v21 = vpop.f32.mrb[4].mxu0  ;;  %v1258_v22 = vpop.f32.mrb[0].mxu1 }
 0x339   : > { %v1751_v23 = vpop.f32.mrb[5].mxu0  ;;  %v1791_v25 = vpop.f32.mrb[1].mxu1  ;;  %v1816_v46 = vadd.f32 %v1815_v35, %v1258_v22  ;;  %v1047_v55 = vadd.f32 %v1570_v54, %v1046_v21 }
 0x33a   : > { %v1049_v27 = vpop.f32.mrb[6].mxu0  ;;  %v1261_v28 = vpop.f32.mrb[2].mxu1 }
 0x33b   : > { %v1752_v29 = vpop.f32.mrb[7].mxu0  ;;  %v1792_v30 = vpop.f32.mrb[3].mxu1  ;;  %v1606_v47 = vmul.f32 -1.442695, %v1816_v46 }
 0x358   : > { %v1151_v36 = vpop.f32.mrb[0].mxu0  ;;  %v1365_v37 = vpop.f32.mrb[4].mxu1 }
 0x359   : > { %v1814_v38 = vadd.f32 %v1813_v34, %v1151_v36  ;;  %v1771_v39 = vpop.f32.mrb[1].mxu0  ;;  %v1811_v40 = vpop.f32.mrb[5].mxu1  ;;  %v1366_v53 = vadd.f32 %v1596_v51, %v1365_v37 }
 0x35a   : > { %v1154_v41 = vpop.f32.mrb[2].mxu0  ;;  %v1368_v42 = vpop.f32.mrb[6].mxu1 }
 0x35b   : > { %v1605_v43 = vmul.f32 -1.442695, %v1814_v38  ;;  %v1772_v44 = vpop.f32.mrb[3].mxu0  ;;  %v1812_v45 = vpop.f32.mrb[7].mxu1 }
 0x35d   : > { %2036 = vpow2.f32 %v1605_v43 }
 0x35e   : > { %2038 = vpow2.f32 %v1606_v47 }
 0x367   : > { %v2037_v48 = vpop.eup %2036 }
 0x368   : > { %v1375_v49 = vadd.f32 1.0, %v2037_v48  ;;  %v2039_v50 = vpop.eup %2038 }
 0x369   : > { %v1382_v52 = vadd.f32 1.0, %v2039_v50 }
 0x36a   : > { %2040 = vrcp.f32 %v1375_v49 }
 0x36b   : > { %2042 = vrcp.f32 %v1382_v52 }
 0x374   : > { %v2041_v24 = vpop.eup %2040 }
 0x375   : > { %v1385_v56 = vmul.f32 %v2041_v24, %v1366_v53  ;;  %v2043_v58 = vpop.eup %2042 }
 0x376   : > { %v1388_v59 = vsub.f32 1.0, %v2043_v58  ;;  %v1390_v61 = vmul.f32 %v2043_v58, %v2664_v3 }
 0x377   : > { %v1386_v57 = vadd.f32 %v1385_v56, %v1047_v55 }
 0x379   : > { %2044 = vtanh.f32 %v1386_v57 }
 0x383   : > { %v2045_v60 = vpop.eup %2044 }
 0x384   : > { %v1389_v62 = vmul.f32 %v2045_v60, %v1388_v59 }
 0x386   : > { %v1391_v63 = vadd.f32 %v1390_v61, %v1389_v62 }
 0x388   : > { %1392 = vst [vmem:[%s2661_s9] sm:$0x1] %v1391_v63 }
 0x389 PF: > { %s2909_s11 = sld [smem:[#allocation24_spill]]  ;;  %s1607_s8 = sshll.u32 %s2290_s20, 4 }
 0x38a   : > { %s2910_s3 = sld [smem:[#allocation36_spill]]  ;;  %s1406_s13 = sshll.u32 %s2661_s9, 4  ;;  %s1407_s13 = int_to_ptr.vmem [resolvable:$true] %s1406_s13 }
 0x38b   : > { %s1394_s10 = scalar_lea.sflag [#allocation10], %s477_s2  ;;  %s2170_s19 = scalar_lea.vmem %s1407_s13, 16 }
 0x38c   : > { %p2171_p2 = scmp.ne.s32.totalorder %s1407_s13, %s2170_s19  ;;  %s2319_s28 = smov [#allocation16]  }
 0x38d   : > { %s2174_s12 = sshll.u32 %s2319_s28, 4  ;;  %s2175_s12 = int_to_ptr.vmem [resolvable:$false] %s2174_s12 }
 0x38e   : > { %s2176_s29 = scalar_lea.vmem %s2175_s12, 32  ;;  %p2177_p8 = scmp.lt.s32.totalorder %s1407_s13, %s2175_s12 }
 0x38f   : > { %p2911_p13 = scmp.ne.s32.totalorder %s2909_s11, 0  ;;  %p2178_p11 = scmp.lt.s32.totalorder %s2176_s29, %s2170_s19 }
 0x390   : > { %s2783_s7 = scalar_lea.hbm %s2910_s3, %s1607_s8 }
 0x391   : > { %p2172_p0 = pnand %p2171_p2, %p2911_p13  ;;  %p2179_p1 = por %p2178_p11, %p2177_p8 }
 0x393   : > { %p2173_p3 = pneg %p2172_p0 }
 0x395   : > { %p2180_p5 = pnand %p2179_p1, %p2173_p3 }
 0x397   : > { %2183 = shalt.err (!%p2180_p5)
}
 0x398   : > { %s2184_s20 = scalar_lea.hbm %s2783_s7, 16  ;;  %s2188_s24 = scalar_lea.hbm %s2910_s3, 64 }
 0x399   : > { %p2185_p12 = scmp.ne.s32.totalorder %s2783_s7, %s2184_s20  ;;  %p2189_p6 = scmp.lt.u32.totalorder %s2783_s7, %s2910_s3 }
 0x39a   : > { %p2190_p7 = scmp.lt.u32.totalorder %s2188_s24, %s2184_s20  ;;  %p2192_p2 = scmp.lt.u32.totalorder %s2184_s20, %s2783_s7 }
 0x39b   : > { %p2186_p10 = pnand %p2185_p12, %p2911_p13 }
 0x39c   : > { %p2191_p9 = por %p2190_p7, %p2189_p6 }
 0x39d   : > { %p2187_p4 = pneg %p2186_p10 }
 0x39e   : > { %p2193_p0 = por %p2192_p2, %p2191_p9 }
 0x3a0   : > { %p2194_p3 = pnand %p2193_p0, %p2187_p4 }
 0x3a2   : > { %2197 = shalt.err (!%p2194_p3)
}
 0x3a3   : > { %1839 = dma.vmem_to_hbm [thread:$0]  (%p2911_p13), %s1407_s13, 16, %s2783_s7, %s1394_s10  }
 0x3a4 PF: > { %s2912_s8 = sld [smem:[#allocation22_spill]]  ;;  %s2913_s27 = sld [smem:[#allocation25_spill]] }
 0x3a5   : > { %p1866_p8 = scmp.ge.s32.totalorder %s2302_s23, 2 }
 0x3aa   : > { %s1418_s30 = sand.u32 1, %s2912_s8   ;;  %p2914_p11 = scmp.ne.s32.totalorder %s2913_s27, 0 }
 0x3ab   : > { %s1419_s19 = scalar_lea.sflag [#allocation10], %s1418_s30 }
 0x3ac   : > { %p1856_p1 = pnand %p1866_p8, %p2914_p11 }
 0x3ae   : > { %2257 = dma.done.wait (!%p1856_p1), %s1419_s19, 16  }
 0x3af   : > { %2259 = vsyncadd (!%p1856_p1), %s1419_s19, 4294967280  ;;  %s36_s23 = sadd.s32 1, %s2302_s23   ;;  %s2915_s28 = smov %s2592_s15 }
 0x3b0   : > { %p33_p5 = scmp.ge.s32.totalorder %s36_s23, 10   ;;  %s2916_s11 = sld [smem:[#allocation26_spill]] }
 0x3b1   : > { %s2917_s7 = smov %s2933_s0  ;;  %s2918_s15 = smov %s2266_s16 }
 0x3b2   : > { %s2919_s16 = smov %s2270_s17  ;;  %s2920_s17 = smov %s2915_s28 }
 0x3b3   : > { %s2921_s0 = smov %s2278_s18  ;;  %s2922_s18 = smov %s2282_s5 }
 0x3b4   : > { %s2923_s5 = smov %s2595_s14  ;;  %s2924_s19 = smov %s2294_s21 }
 0x3b5   : > { %s2925_s20 = smov %s2298_s22  ;;  %s2927_s22 = smov %s2917_s7 }
 0x3b6   : > { %s2926_s21 = smov %s2916_s11  ;;  %35 = sbr.rel (!%p33_p5) target bundleno = 28 (0x1c), region = 140 }
 0x3bd   :  { %1423 = vsyncpa [#allocation9], 1 }
 0x3be   :  { %1425 = vsyncpa [#allocation9 + $0x1], 1 }
 0x3bf   :  { %1426 = vsyncpa [#allocation12], 1 }
 0x3c0   :  { %1427 = vsyncpa [#allocation15], 1 }
 0x3c1   :  { %1428 = vsyncpa [#allocation10], 1 }
 0x3c2   :  { %1430 = vsyncpa [#allocation10 + $0x1], 1 }

</bundles_post_ra>
